<compile_context>
chip_gen: v6e
topology: v6e:2x2x1
jax: 0.10.0
libtpu: 0.0.40
codegen_flags: <defaults>
</compile_context>

<pallas_src>
import jax
import jax.numpy as jnp
from jax.experimental import pallas as pl
from jax.experimental.pallas import tpu as pltpu

EPS = 1e-5
LANES = 128                 # output channels padded to this -> lane-dense stores
MAX_TM = 512                # max rows (N*Ho*Wo) per grid step
MAX_TK = 1024               # max K (9*Cin) per grid step
VMEM_LIMIT = 32 * 1024 * 1024


def _round_up(a, b):
    return (a + b - 1) // b * b


# ----------------------------- Pallas kernels -----------------------------

def _matmul_bias_kernel(p_ref, w_ref, b_ref, o_ref, acc_ref):
    """o = patches @ W + b, tiled over (M, K) with an f32 VMEM accumulator."""
    k = pl.program_id(1)

    @pl.when(k == 0)
    def _init():
        acc_ref[...] = jnp.zeros_like(acc_ref)

    acc_ref[...] += jnp.dot(p_ref[...], w_ref[...],
                            preferred_element_type=jnp.float32)

    @pl.when(k == pl.num_programs(1) - 1)
    def _finalize():
        o_ref[...] = acc_ref[...] + b_ref[...]


def _scale_shift_relu_kernel(z_ref, s_ref, t_ref, o_ref):
    """o = relu(z * s + t) — BN application (phase B) + ReLU, lane-dense elementwise."""
    o_ref[...] = jnp.maximum(z_ref[...] * s_ref[...] + t_ref[...], 0.0)


def _pallas_matmul_bias(patches, wmat, bias, compute_dtype):
    """Tiled (M,K)@(K,C) + bias. Returns f32 (M_pad, C_pad), C_pad a multiple of 128."""
    M, K = patches.shape
    Kw, C = wmat.shape
    assert K == Kw
    c_pad = _round_up(C, LANES)
    tm = min(MAX_TM, _round_up(M, 8))
    m_pad = _round_up(M, tm)
    tk = K if K <= MAX_TK else MAX_TK
    k_pad = _round_up(K, tk)

    p = patches
    if (m_pad, k_pad) != (M, K):
        p = jnp.pad(p, ((0, m_pad - M), (0, k_pad - K)))
    w = wmat
    if (k_pad, c_pad) != (K, C):
        w = jnp.pad(w, ((0, k_pad - K), (0, c_pad - C)))
    b = jnp.pad(bias.reshape(1, C).astype(jnp.float32), ((0, 0), (0, c_pad - C)))

    p = p.astype(compute_dtype)
    w = w.astype(compute_dtype)

    grid = (m_pad // tm, k_pad // tk)
    return pl.pallas_call(
        _matmul_bias_kernel,
        grid=grid,
        in_specs=[pl.BlockSpec((tm, tk), lambda i, k: (i, k)),
                  pl.BlockSpec((tk, c_pad), lambda i, k: (k, 0)),
                  pl.BlockSpec((1, c_pad), lambda i, k: (0, 0))],
        out_specs=pl.BlockSpec((tm, c_pad), lambda i, k: (i, 0)),
        out_shape=jax.ShapeDtypeStruct((m_pad, c_pad), jnp.float32),
        scratch_shapes=[pltpu.VMEM((tm, c_pad), jnp.float32)],
        compiler_params=pltpu.CompilerParams(
            dimension_semantics=("parallel", "arbitrary"),
            vmem_limit_bytes=VMEM_LIMIT),
    )(p, w, b)


def _pallas_scale_shift_relu(z, scale, shift):
    """relu(z*scale + shift) over the padded (M_pad, C_pad) activation, tiled over M."""
    m_pad, c_pad = z.shape
    tm = min(MAX_TM, m_pad)
    return pl.pallas_call(
        _scale_shift_relu_kernel,
        grid=(m_pad // tm,),
        in_specs=[pl.BlockSpec((tm, c_pad), lambda i: (i, 0)),
                  pl.BlockSpec((1, c_pad), lambda i: (0, 0)),
                  pl.BlockSpec((1, c_pad), lambda i: (0, 0))],
        out_specs=pl.BlockSpec((tm, c_pad), lambda i: (i, 0)),
        out_shape=jax.ShapeDtypeStruct((m_pad, c_pad), jnp.float32),
        compiler_params=pltpu.CompilerParams(
            dimension_semantics=("parallel",),
            vmem_limit_bytes=VMEM_LIMIT),
    )(z, scale, shift)


# ----------------------------- JAX glue (NHWC im2col, layer wrappers) -----------------------------

def _im2col_nhwc(x, kh, kw, pad):
    """x: (N,H,W,C) -> (N*Ho*Wo, kh*kw*C); column order (kh_tap, kw_tap, ci)."""
    N, H, W, C = x.shape
    xp = jnp.pad(x, ((0, 0), (pad, pad), (pad, pad), (0, 0)))
    Ho = H + 2 * pad - kh + 1
    Wo = W + 2 * pad - kw + 1
    cols = [xp[:, i:i + Ho, j:j + Wo, :] for i in range(kh) for j in range(kw)]
    patches = jnp.stack(cols, axis=3)                       # (N, Ho, Wo, kh*kw, C)
    return patches.reshape(N * Ho * Wo, kh * kw * C), Ho, Wo


def conv_transpose2d_nhwc(x, wt, bt, compute_dtype):
    """torch ConvTranspose2d(in, out, 4, stride=2, padding=1) on NHWC x, no zero-stuffing.

    out[n, 2i+py, 2j+px, co] = bt[co] + sum_{ci, ry, rx in {-1,0,1}}
        x[n, i+ry, j+rx, ci] * wt[ci, co, py+1-2*ry, px+1-2*rx]        (taps outside [0,4) are 0)
    i.e. one 3x3/pad-1 conv to 4*Cout parity groups, then a 2x2 depth-to-space shuffle.
    """
    N, H, W, Cin = x.shape
    Cout = wt.shape[1]
    patches, _, _ = _im2col_nhwc(x, 3, 3, 1)

    wps = jnp.zeros((3, 3, Cin, 2, 2, Cout), wt.dtype)
    for ry in (-1, 0, 1):
        for rx in (-1, 0, 1):
            for py in (0, 1):
                for px in (0, 1):
                    ky = py + 1 - 2 * ry
                    kx = px + 1 - 2 * rx
                    if 0 <= ky < 4 and 0 <= kx < 4:
                        wps = wps.at[ry + 1, rx + 1, :, py, px, :].set(wt[:, :, ky, kx])
    wmat = wps.reshape(9 * Cin, 4 * Cout)
    bias = jnp.tile(bt, 4)                                   # column order (py, px, co)

    M = N * H * W
    z = _pallas_matmul_bias(patches, wmat, bias, compute_dtype)[:M, :4 * Cout]
    z = z.reshape(N, H, W, 2, 2, Cout)
    return jnp.transpose(z, (0, 1, 3, 2, 4, 5)).reshape(N, 2 * H, 2 * W, Cout)


def conv3x3_bn_relu_nhwc(x, w, b, gamma, beta, compute_dtype):
    """Conv2d(3x3, pad=1) + BatchNorm2d (training-mode batch stats) + ReLU on NHWC x."""
    N, H, W, Cin = x.shape
    Cout = w.shape[0]
    patches, Ho, Wo = _im2col_nhwc(x, 3, 3, 1)
    wmat = jnp.transpose(w, (2, 3, 1, 0)).reshape(9 * Cin, Cout)
    M = N * Ho * Wo

    z = _pallas_matmul_bias(patches, wmat, b, compute_dtype)  # (M_pad, C_pad) f32 pre-BN
    c_pad = z.shape[1]

    # Two-phase BN: per-channel batch stats in f32 over the valid rows, folded into a
    # single scale/shift, then applied together with ReLU in a lane-dense Pallas kernel.
    zv = z[:M, :Cout]
    mean = jnp.mean(zv, axis=0)
    var = jnp.mean(jnp.square(zv - mean), axis=0)             # biased var (torch training norm)
    scale = gamma * jax.lax.rsqrt(var + EPS)
    shift = beta - mean * scale
    scale_p = jnp.zeros((1, c_pad), jnp.float32).at[0, :Cout].set(scale)
    shift_p = jnp.zeros((1, c_pad), jnp.float32).at[0, :Cout].set(shift)

    out = _pallas_scale_shift_relu(z, scale_p, shift_p)
    return out[:M, :Cout].reshape(N, Ho, Wo, Cout)


def upsample_block_forward(params, x, y, *, compute_dtype=jnp.bfloat16):
    """x: (N, in_ch, H, W), y: (N, out_ch, 2H, 2W) in NCHW (torch layout)."""
    xh = jnp.transpose(x, (0, 2, 3, 1))                       # NHWC internally
    yh = jnp.transpose(y, (0, 2, 3, 1))
    up = conv_transpose2d_nhwc(xh, params["wt"], params["bt"], compute_dtype)
    cat = jnp.concatenate([up, yh], axis=-1)                  # cheap last-axis concat in NHWC
    h = conv3x3_bn_relu_nhwc(cat, params["w1"], params["b1"], params["g1"], params["beta1"],
                             compute_dtype)
    h = conv3x3_bn_relu_nhwc(h, params["w2"], params["b2"], params["g2"], params["beta2"],
                             compute_dtype)
    return jnp.transpose(h, (0, 3, 1, 2))


# ----------------------------- pure-JAX reference -----------------------------

def _reference(params, x, y):
    dn = ("NCHW", "OIHW", "NCHW")
    hi = jax.lax.Precision.HIGHEST

    w_eq = jnp.flip(params["wt"], axis=(2, 3)).transpose(1, 0, 2, 3)
    xt = jax.lax.conv_general_dilated(x, w_eq, (1, 1), ((2, 2), (2, 2)),
                                      lhs_dilation=(2, 2), dimension_numbers=dn, precision=hi)
    xt = xt + params["bt"][None, :, None, None]
    xc = jnp.concatenate([xt, y], axis=1)

    def cbr(z, w, b, g, be):
        z = jax.lax.conv_general_dilated(z, w, (1, 1), ((1, 1), (1, 1)),
                                         dimension_numbers=dn, precision=hi)
        z = z + b[None, :, None, None]
        m = z.mean(axis=(0, 2, 3), keepdims=True)
        v = ((z - m) ** 2).mean(axis=(0, 2, 3), keepdims=True)
        z = (z - m) * jax.lax.rsqrt(v + EPS) * g[None, :, None, None] + be[None, :, None, None]
        return jnp.maximum(z, 0.0)

    z = cbr(xc, params["w1"], params["b1"], params["g1"], params["beta1"])
    z = cbr(z, params["w2"], params["b2"], params["g2"], params["beta2"])
    return z


# ----------------------------- main -----------------------------

if __name__ == "__main__":
    in_ch, out_ch = 8, 4          # UNet convention: in_channels = 2 * out_channels
    N, H, W = 2, 8, 8             # x spatial; skip connection y is (N, out_ch, 2H, 2W)

    key = jax.random.PRNGKey(0)
    ks = jax.random.split(key, 12)

    params = {
        "wt": 0.1 * jax.random.normal(ks[0], (in_ch, out_ch, 4, 4), jnp.float32),
        "bt": 0.1 * jax.random.normal(ks[1], (out_ch,), jnp.float32),
        "w1": 0.1 * jax.random.normal(ks[2], (out_ch, in_ch, 3, 3), jnp.float32),
        "b1": 0.1 * jax.random.normal(ks[3], (out_ch,), jnp.float32),
        "g1": 1.0 + 0.1 * jax.random.normal(ks[4], (out_ch,), jnp.float32),
        "beta1": 0.1 * jax.random.normal(ks[5], (out_ch,), jnp.float32),
        "w2": 0.1 * jax.random.normal(ks[6], (out_ch, out_ch, 3, 3), jnp.float32),
        "b2": 0.1 * jax.random.normal(ks[7], (out_ch,), jnp.float32),
        "g2": 1.0 + 0.1 * jax.random.normal(ks[8], (out_ch,), jnp.float32),
        "beta2": 0.1 * jax.random.normal(ks[9], (out_ch,), jnp.float32),
    }

    x = jax.random.normal(ks[10], (N, in_ch, H, W), jnp.float32)
    y = jax.random.normal(ks[11], (N, out_ch, 2 * H, 2 * W), jnp.float32)

    fwd = jax.jit(upsample_block_forward, static_argnames="compute_dtype")
    ref = jax.block_until_ready(_reference(params, x, y))

    # 1) Exact-semantics check: f32 matmul path must match the f32 reference tightly.
    out_f32 = jax.block_until_ready(fwd(params, x, y, compute_dtype=jnp.float32))
    assert out_f32.shape == (N, out_ch, 2 * H, 2 * W), out_f32.shape
    err_f32 = float(jnp.max(jnp.abs(out_f32 - ref)))
    assert err_f32 < 1e-4, err_f32

    # 2) Performance path: bf16 MXU inputs, f32 accumulation (looser tolerance for bf16 rounding).
    out = jax.block_until_ready(fwd(params, x, y, compute_dtype=jnp.bfloat16))
    assert out.shape == (N, out_ch, 2 * H, 2 * W), out.shape
    err_bf16 = float(jnp.max(jnp.abs(out - ref)))
    assert err_bf16 < 5e-2, err_bf16

    print("KERNEL_OK")
</pallas_src>

<mosaic_0001>
module attributes {stable_mosaic.version = 11 : i64} {
  func.func @_matmul_bias_kernel(%arg0: i32, %arg1: i32, %arg2: memref<128x72xf32, #tpu.memory_space<vmem>>, %arg3: memref<72x128xf32, #tpu.memory_space<vmem>>, %arg4: memref<1x128xf32, #tpu.memory_space<vmem>>, %arg5: memref<128x128xf32, #tpu.memory_space<vmem>>, %arg6: memref<128x128xf32, #tpu.memory_space<vmem>>) attributes {dimension_semantics = [#tpu.dimension_semantics<parallel>, #tpu.dimension_semantics<arbitrary>], iteration_bounds = array<i64: 1, 1>, scalar_prefetch = 0 : i64, scratch_operands = 1 : i64, tpu.core_type = #tpu.core_type<tc>, window_params = [{transform_indices = @transform_0, window_bounds = array<i64: 128, 72>}, {transform_indices = @transform_1, window_bounds = array<i64: 72, 128>}, {pipeline_mode = #tpu.pipeline_mode<synchronous>, transform_indices = @transform_2, window_bounds = array<i64: 1, 128>}, {transform_indices = @transform_3, window_bounds = array<i64: 128, 128>}]} {
    %c0_i32 = arith.constant 0 : i32
    %0 = arith.cmpi eq, %arg1, %c0_i32 : i32
    %1 = arith.extui %0 : i1 to i32
    %c0_i32_0 = arith.constant 0 : i32
    %2 = arith.cmpi ne, %1, %c0_i32_0 : i32
    scf.if %2 {
      %cst_10 = arith.constant 0.000000e+00 : f32
      %12 = vector.broadcast %cst_10 : f32 to vector<128x128xf32>
      %c0_11 = arith.constant 0 : index
      %c0_12 = arith.constant 0 : index
      %13 = vector.load %arg6[%c0_11, %c0_12] : memref<128x128xf32, #tpu.memory_space<vmem>>, vector<128x128xf32>
      tpu.vector_store %arg6[%c0_11, %c0_12], %12 {strides = array<i32>} : memref<128x128xf32, #tpu.memory_space<vmem>>, vector<128x128xf32>,
    } else {
    }
    %c0 = arith.constant 0 : index
    %c0_1 = arith.constant 0 : index
    %3 = vector.load %arg6[%c0, %c0_1] : memref<128x128xf32, #tpu.memory_space<vmem>>, vector<128x128xf32>
    %c0_2 = arith.constant 0 : index
    %c0_3 = arith.constant 0 : index
    %4 = vector.load %arg2[%c0_2, %c0_3] : memref<128x72xf32, #tpu.memory_space<vmem>>, vector<128x72xf32>
    %c0_4 = arith.constant 0 : index
    %c0_5 = arith.constant 0 : index
    %5 = vector.load %arg3[%c0_4, %c0_5] : memref<72x128xf32, #tpu.memory_space<vmem>>, vector<72x128xf32>
    %cst = arith.constant dense<0.000000e+00> : vector<128x128xf32>
    %6 = tpu.matmul %4, %5, %cst {dimension_numbers = #tpu.dot_dimension_numbers<[1], [0], [0], [1], [0, 0, 1, 1], [], []>} : vector<128x72xf32>, vector<72x128xf32>, vector<128x128xf32> -> vector<128x128xf32>
    %7 = arith.addf %3, %6 : vector<128x128xf32>
    %c0_6 = arith.constant 0 : index
    %c0_7 = arith.constant 0 : index
    %8 = vector.load %arg6[%c0_6, %c0_7] : memref<128x128xf32, #tpu.memory_space<vmem>>, vector<128x128xf32>
    tpu.vector_store %arg6[%c0_6, %c0_7], %7 {strides = array<i32>} : memref<128x128xf32, #tpu.memory_space<vmem>>, vector<128x128xf32>,
    %c0_i32_8 = arith.constant 0 : i32
    %9 = arith.cmpi eq, %arg1, %c0_i32_8 : i32
    %10 = arith.extui %9 : i1 to i32
    %c0_i32_9 = arith.constant 0 : i32
    %11 = arith.cmpi ne, %10, %c0_i32_9 : i32
    scf.if %11 {
      %c0_10 = arith.constant 0 : index
      %c0_11 = arith.constant 0 : index
      %12 = vector.load %arg6[%c0_10, %c0_11] : memref<128x128xf32, #tpu.memory_space<vmem>>, vector<128x128xf32>
      %c0_12 = arith.constant 0 : index
      %c0_13 = arith.constant 0 : index
      %13 = vector.load %arg4[%c0_12, %c0_13] : memref<1x128xf32, #tpu.memory_space<vmem>>, vector<1x128xf32>
      %14 = vector.broadcast %13 : vector<1x128xf32> to vector<128x128xf32>
      %15 = arith.addf %12, %14 : vector<128x128xf32>
      %c0_14 = arith.constant 0 : index
      %c0_15 = arith.constant 0 : index
      %16 = vector.load %arg5[%c0_14, %c0_15] : memref<128x128xf32, #tpu.memory_space<vmem>>, vector<128x128xf32>
      tpu.vector_store %arg5[%c0_14, %c0_15], %15 {strides = array<i32>} : memref<128x128xf32, #tpu.memory_space<vmem>>, vector<128x128xf32>,
    } else {
    }
    return
  }
  func.func @transform_0(%arg0: i32, %arg1: i32) -> (i32, i32) {
    %c0_i32 = arith.constant 0 : i32
    return %arg0, %arg1 : i32, i32
  }
  func.func @transform_1(%arg0: i32, %arg1: i32) -> (i32, i32) {
    %c0_i32 = arith.constant 0 : i32
    %c0_i32_0 = arith.constant 0 : i32
    return %arg1, %c0_i32 : i32, i32
  }
  func.func @transform_2(%arg0: i32, %arg1: i32) -> (i32, i32) {
    %c0_i32 = arith.constant 0 : i32
    %c0_i32_0 = arith.constant 0 : i32
    %c0_i32_1 = arith.constant 0 : i32
    return %c0_i32, %c0_i32_0 : i32, i32
  }
  func.func @transform_3(%arg0: i32, %arg1: i32) -> (i32, i32) {
    %c0_i32 = arith.constant 0 : i32
    %c0_i32_0 = arith.constant 0 : i32
    return %arg0, %c0_i32 : i32, i32
  }
}

module attributes {stable_mosaic.version = 11 : i64} {
  func.func @_matmul_bias_kernel(%arg0: i32, %arg1: i32, %arg2: memref<512x72xf32, #tpu.memory_space<vmem>>, %arg3: memref<72x128xf32, #tpu.memory_space<vmem>>, %arg4: memref<1x128xf32, #tpu.memory_space<vmem>>, %arg5: memref<512x128xf32, #tpu.memory_space<vmem>>, %arg6: memref<512x128xf32, #tpu.memory_space<vmem>>) attributes {dimension_semantics = [#tpu.dimension_semantics<parallel>, #tpu.dimension_semantics<arbitrary>], iteration_bounds = array<i64: 1, 1>, scalar_prefetch = 0 : i64, scratch_operands = 1 : i64, tpu.core_type = #tpu.core_type<tc>, window_params = [{transform_indices = @transform_0, window_bounds = array<i64: 512, 72>}, {transform_indices = @transform_1, window_bounds = array<i64: 72, 128>}, {pipeline_mode = #tpu.pipeline_mode<synchronous>, transform_indices = @transform_2, window_bounds = array<i64: 1, 128>}, {transform_indices = @transform_3, window_bounds = array<i64: 512, 128>}]} {
    %c0_i32 = arith.constant 0 : i32
    %0 = arith.cmpi eq, %arg1, %c0_i32 : i32
    %1 = arith.extui %0 : i1 to i32
    %c0_i32_0 = arith.constant 0 : i32
    %2 = arith.cmpi ne, %1, %c0_i32_0 : i32
    scf.if %2 {
      %cst_10 = arith.constant 0.000000e+00 : f32
      %12 = vector.broadcast %cst_10 : f32 to vector<512x128xf32>
      %c0_11 = arith.constant 0 : index
      %c0_12 = arith.constant 0 : index
      %13 = vector.load %arg6[%c0_11, %c0_12] : memref<512x128xf32, #tpu.memory_space<vmem>>, vector<512x128xf32>
      tpu.vector_store %arg6[%c0_11, %c0_12], %12 {strides = array<i32>} : memref<512x128xf32, #tpu.memory_space<vmem>>, vector<512x128xf32>,
    } else {
    }
    %c0 = arith.constant 0 : index
    %c0_1 = arith.constant 0 : index
    %3 = vector.load %arg6[%c0, %c0_1] : memref<512x128xf32, #tpu.memory_space<vmem>>, vector<512x128xf32>
    %c0_2 = arith.constant 0 : index
    %c0_3 = arith.constant 0 : index
    %4 = vector.load %arg2[%c0_2, %c0_3] : memref<512x72xf32, #tpu.memory_space<vmem>>, vector<512x72xf32>
    %c0_4 = arith.constant 0 : index
    %c0_5 = arith.constant 0 : index
    %5 = vector.load %arg3[%c0_4, %c0_5] : memref<72x128xf32, #tpu.memory_space<vmem>>, vector<72x128xf32>
    %cst = arith.constant dense<0.000000e+00> : vector<512x128xf32>
    %6 = tpu.matmul %4, %5, %cst {dimension_numbers = #tpu.dot_dimension_numbers<[1], [0], [0], [1], [0, 0, 1, 1], [], []>} : vector<512x72xf32>, vector<72x128xf32>, vector<512x128xf32> -> vector<512x128xf32>
    %7 = arith.addf %3, %6 : vector<512x128xf32>
    %c0_6 = arith.constant 0 : index
    %c0_7 = arith.constant 0 : index
    %8 = vector.load %arg6[%c0_6, %c0_7] : memref<512x128xf32, #tpu.memory_space<vmem>>, vector<512x128xf32>
    tpu.vector_store %arg6[%c0_6, %c0_7], %7 {strides = array<i32>} : memref<512x128xf32, #tpu.memory_space<vmem>>, vector<512x128xf32>,
    %c0_i32_8 = arith.constant 0 : i32
    %9 = arith.cmpi eq, %arg1, %c0_i32_8 : i32
    %10 = arith.extui %9 : i1 to i32
    %c0_i32_9 = arith.constant 0 : i32
    %11 = arith.cmpi ne, %10, %c0_i32_9 : i32
    scf.if %11 {
      %c0_10 = arith.constant 0 : index
      %c0_11 = arith.constant 0 : index
      %12 = vector.load %arg6[%c0_10, %c0_11] : memref<512x128xf32, #tpu.memory_space<vmem>>, vector<512x128xf32>
      %c0_12 = arith.constant 0 : index
      %c0_13 = arith.constant 0 : index
      %13 = vector.load %arg4[%c0_12, %c0_13] : memref<1x128xf32, #tpu.memory_space<vmem>>, vector<1x128xf32>
      %14 = vector.broadcast %13 : vector<1x128xf32> to vector<512x128xf32>
      %15 = arith.addf %12, %14 : vector<512x128xf32>
      %c0_14 = arith.constant 0 : index
      %c0_15 = arith.constant 0 : index
      %16 = vector.load %arg5[%c0_14, %c0_15] : memref<512x128xf32, #tpu.memory_space<vmem>>, vector<512x128xf32>
      tpu.vector_store %arg5[%c0_14, %c0_15], %15 {strides = array<i32>} : memref<512x128xf32, #tpu.memory_space<vmem>>, vector<512x128xf32>,
    } else {
    }
    return
  }
  func.func @transform_0(%arg0: i32, %arg1: i32) -> (i32, i32) {
    %c0_i32 = arith.constant 0 : i32
    return %arg0, %arg1 : i32, i32
  }
  func.func @transform_1(%arg0: i32, %arg1: i32) -> (i32, i32) {
    %c0_i32 = arith.constant 0 : i32
    %c0_i32_0 = arith.constant 0 : i32
    return %arg1, %c0_i32 : i32, i32
  }
  func.func @transform_2(%arg0: i32, %arg1: i32) -> (i32, i32) {
    %c0_i32 = arith.constant 0 : i32
    %c0_i32_0 = arith.constant 0 : i32
    %c0_i32_1 = arith.constant 0 : i32
    return %c0_i32, %c0_i32_0 : i32, i32
  }
  func.func @transform_3(%arg0: i32, %arg1: i32) -> (i32, i32) {
    %c0_i32 = arith.constant 0 : i32
    %c0_i32_0 = arith.constant 0 : i32
    return %arg0, %c0_i32 : i32, i32
  }
}

module attributes {stable_mosaic.version = 11 : i64} {
  func.func @_scale_shift_relu_kernel(%arg0: i32, %arg1: memref<512x128xf32, #tpu.memory_space<vmem>>, %arg2: memref<1x128xf32, #tpu.memory_space<vmem>>, %arg3: memref<1x128xf32, #tpu.memory_space<vmem>>, %arg4: memref<512x128xf32, #tpu.memory_space<vmem>>) attributes {dimension_semantics = [#tpu.dimension_semantics<parallel>], iteration_bounds = array<i64: 1>, scalar_prefetch = 0 : i64, scratch_operands = 0 : i64, tpu.core_type = #tpu.core_type<tc>, window_params = [{transform_indices = @transform_0, window_bounds = array<i64: 512, 128>}, {pipeline_mode = #tpu.pipeline_mode<synchronous>, transform_indices = @transform_1, window_bounds = array<i64: 1, 128>}, {pipeline_mode = #tpu.pipeline_mode<synchronous>, transform_indices = @transform_2, window_bounds = array<i64: 1, 128>}, {transform_indices = @transform_3, window_bounds = array<i64: 512, 128>}]} {
    %c0 = arith.constant 0 : index
    %c0_0 = arith.constant 0 : index
    %0 = vector.load %arg1[%c0, %c0_0] : memref<512x128xf32, #tpu.memory_space<vmem>>, vector<512x128xf32>
    %c0_1 = arith.constant 0 : index
    %c0_2 = arith.constant 0 : index
    %1 = vector.load %arg2[%c0_1, %c0_2] : memref<1x128xf32, #tpu.memory_space<vmem>>, vector<1x128xf32>
    %2 = vector.broadcast %1 : vector<1x128xf32> to vector<512x128xf32>
    %3 = arith.mulf %0, %2 : vector<512x128xf32>
    %c0_3 = arith.constant 0 : index
    %c0_4 = arith.constant 0 : index
    %4 = vector.load %arg3[%c0_3, %c0_4] : memref<1x128xf32, #tpu.memory_space<vmem>>, vector<1x128xf32>
    %5 = vector.broadcast %4 : vector<1x128xf32> to vector<512x128xf32>
    %6 = arith.addf %3, %5 : vector<512x128xf32>
    %cst = arith.constant 0.000000e+00 : f32
    %7 = vector.broadcast %cst : f32 to vector<512x128xf32>
    %8 = arith.maximumf %6, %7 : vector<512x128xf32>
    %c0_5 = arith.constant 0 : index
    %c0_6 = arith.constant 0 : index
    %9 = vector.load %arg4[%c0_5, %c0_6] : memref<512x128xf32, #tpu.memory_space<vmem>>, vector<512x128xf32>
    tpu.vector_store %arg4[%c0_5, %c0_6], %8 {strides = array<i32>} : memref<512x128xf32, #tpu.memory_space<vmem>>, vector<512x128xf32>,
    return
  }
  func.func @transform_0(%arg0: i32) -> (i32, i32) {
    %c0_i32 = arith.constant 0 : i32
    %c0_i32_0 = arith.constant 0 : i32
    return %arg0, %c0_i32 : i32, i32
  }
  func.func @transform_1(%arg0: i32) -> (i32, i32) {
    %c0_i32 = arith.constant 0 : i32
    %c0_i32_0 = arith.constant 0 : i32
    %c0_i32_1 = arith.constant 0 : i32
    return %c0_i32, %c0_i32_0 : i32, i32
  }
  func.func @transform_2(%arg0: i32) -> (i32, i32) {
    %c0_i32 = arith.constant 0 : i32
    %c0_i32_0 = arith.constant 0 : i32
    %c0_i32_1 = arith.constant 0 : i32
    return %c0_i32, %c0_i32_0 : i32, i32
  }
  func.func @transform_3(%arg0: i32) -> (i32, i32) {
    %c0_i32 = arith.constant 0 : i32
    %c0_i32_0 = arith.constant 0 : i32
    return %arg0, %c0_i32 : i32, i32
  }
}

module attributes {stable_mosaic.version = 11 : i64} {
  func.func @_matmul_bias_kernel(%arg0: i32, %arg1: i32, %arg2: memref<512x36xf32, #tpu.memory_space<vmem>>, %arg3: memref<36x128xf32, #tpu.memory_space<vmem>>, %arg4: memref<1x128xf32, #tpu.memory_space<vmem>>, %arg5: memref<512x128xf32, #tpu.memory_space<vmem>>, %arg6: memref<512x128xf32, #tpu.memory_space<vmem>>) attributes {dimension_semantics = [#tpu.dimension_semantics<parallel>, #tpu.dimension_semantics<arbitrary>], iteration_bounds = array<i64: 1, 1>, scalar_prefetch = 0 : i64, scratch_operands = 1 : i64, tpu.core_type = #tpu.core_type<tc>, window_params = [{transform_indices = @transform_0, window_bounds = array<i64: 512, 36>}, {transform_indices = @transform_1, window_bounds = array<i64: 36, 128>}, {pipeline_mode = #tpu.pipeline_mode<synchronous>, transform_indices = @transform_2, window_bounds = array<i64: 1, 128>}, {transform_indices = @transform_3, window_bounds = array<i64: 512, 128>}]} {
    %c0_i32 = arith.constant 0 : i32
    %0 = arith.cmpi eq, %arg1, %c0_i32 : i32
    %1 = arith.extui %0 : i1 to i32
    %c0_i32_0 = arith.constant 0 : i32
    %2 = arith.cmpi ne, %1, %c0_i32_0 : i32
    scf.if %2 {
      %cst_10 = arith.constant 0.000000e+00 : f32
      %12 = vector.broadcast %cst_10 : f32 to vector<512x128xf32>
      %c0_11 = arith.constant 0 : index
      %c0_12 = arith.constant 0 : index
      %13 = vector.load %arg6[%c0_11, %c0_12] : memref<512x128xf32, #tpu.memory_space<vmem>>, vector<512x128xf32>
      tpu.vector_store %arg6[%c0_11, %c0_12], %12 {strides = array<i32>} : memref<512x128xf32, #tpu.memory_space<vmem>>, vector<512x128xf32>,
    } else {
    }
    %c0 = arith.constant 0 : index
    %c0_1 = arith.constant 0 : index
    %3 = vector.load %arg6[%c0, %c0_1] : memref<512x128xf32, #tpu.memory_space<vmem>>, vector<512x128xf32>
    %c0_2 = arith.constant 0 : index
    %c0_3 = arith.constant 0 : index
    %4 = vector.load %arg2[%c0_2, %c0_3] : memref<512x36xf32, #tpu.memory_space<vmem>>, vector<512x36xf32>
    %c0_4 = arith.constant 0 : index
    %c0_5 = arith.constant 0 : index
    %5 = vector.load %arg3[%c0_4, %c0_5] : memref<36x128xf32, #tpu.memory_space<vmem>>, vector<36x128xf32>
    %cst = arith.constant dense<0.000000e+00> : vector<512x128xf32>
    %6 = tpu.matmul %4, %5, %cst {dimension_numbers = #tpu.dot_dimension_numbers<[1], [0], [0], [1], [0, 0, 1, 1], [], []>} : vector<512x36xf32>, vector<36x128xf32>, vector<512x128xf32> -> vector<512x128xf32>
    %7 = arith.addf %3, %6 : vector<512x128xf32>
    %c0_6 = arith.constant 0 : index
    %c0_7 = arith.constant 0 : index
    %8 = vector.load %arg6[%c0_6, %c0_7] : memref<512x128xf32, #tpu.memory_space<vmem>>, vector<512x128xf32>
    tpu.vector_store %arg6[%c0_6, %c0_7], %7 {strides = array<i32>} : memref<512x128xf32, #tpu.memory_space<vmem>>, vector<512x128xf32>,
    %c0_i32_8 = arith.constant 0 : i32
    %9 = arith.cmpi eq, %arg1, %c0_i32_8 : i32
    %10 = arith.extui %9 : i1 to i32
    %c0_i32_9 = arith.constant 0 : i32
    %11 = arith.cmpi ne, %10, %c0_i32_9 : i32
    scf.if %11 {
      %c0_10 = arith.constant 0 : index
      %c0_11 = arith.constant 0 : index
      %12 = vector.load %arg6[%c0_10, %c0_11] : memref<512x128xf32, #tpu.memory_space<vmem>>, vector<512x128xf32>
      %c0_12 = arith.constant 0 : index
      %c0_13 = arith.constant 0 : index
      %13 = vector.load %arg4[%c0_12, %c0_13] : memref<1x128xf32, #tpu.memory_space<vmem>>, vector<1x128xf32>
      %14 = vector.broadcast %13 : vector<1x128xf32> to vector<512x128xf32>
      %15 = arith.addf %12, %14 : vector<512x128xf32>
      %c0_14 = arith.constant 0 : index
      %c0_15 = arith.constant 0 : index
      %16 = vector.load %arg5[%c0_14, %c0_15] : memref<512x128xf32, #tpu.memory_space<vmem>>, vector<512x128xf32>
      tpu.vector_store %arg5[%c0_14, %c0_15], %15 {strides = array<i32>} : memref<512x128xf32, #tpu.memory_space<vmem>>, vector<512x128xf32>,
    } else {
    }
    return
  }
  func.func @transform_0(%arg0: i32, %arg1: i32) -> (i32, i32) {
    %c0_i32 = arith.constant 0 : i32
    return %arg0, %arg1 : i32, i32
  }
  func.func @transform_1(%arg0: i32, %arg1: i32) -> (i32, i32) {
    %c0_i32 = arith.constant 0 : i32
    %c0_i32_0 = arith.constant 0 : i32
    return %arg1, %c0_i32 : i32, i32
  }
  func.func @transform_2(%arg0: i32, %arg1: i32) -> (i32, i32) {
    %c0_i32 = arith.constant 0 : i32
    %c0_i32_0 = arith.constant 0 : i32
    %c0_i32_1 = arith.constant 0 : i32
    return %c0_i32, %c0_i32_0 : i32, i32
  }
  func.func @transform_3(%arg0: i32, %arg1: i32) -> (i32, i32) {
    %c0_i32 = arith.constant 0 : i32
    %c0_i32_0 = arith.constant 0 : i32
    return %arg0, %c0_i32 : i32, i32
  }
}

</mosaic_0001>

<bundles_post_ra>
// kernel: tile.8
= control target key start
LH: loop header
LB: loop body
LE: loop exit
PB: predicated region body
PF: predicated region fallthrough
CT: control target
= control target key end

     0   :  { %s22_s0 = inlined_call_operand.vmem [shape: f32[4], index: 0, kind: input, shape index: {}]   ;;  %s23_s1 = inlined_call_operand.vmem [shape: f32[4,4], index: 1, kind: output, shape index: {}]  }
   0x1   :  { %v4_v0 = vld [vmem:[%s22_s0] ss:$0 sm:$0xff] }
   0x2   :  { %5 = vst [vmem:[%s23_s1] sm:$0xf] %v4_v0 }

// kernel: tile.9
= control target key start
LH: loop header
LB: loop body
LE: loop exit
PB: predicated region body
PF: predicated region fallthrough
CT: control target
= control target key end

     0   :  { %vm8_vm0 = vcmask 31744   ;;  %s40_s8 = smov 4   ;;  %s41_s9 = smov 8   ;;  %vm14_vm1 = vcmask 130144   ;;  %vm20_vm2 = vcmask 97344   ;;  %vm26_vm3 = vcmask 64544   ;;  %s58_s0 = inlined_call_operand.vmem [shape: f32[4,4], index: 0, kind: input, shape index: {}]   ;;  %s59_s1 = inlined_call_operand.vmem [shape: f32[1,16], index: 1, kind: output, shape index: {}]  }
   0x1   :  { %v5_v0 = vld [vmem:[%s58_s0] sm:$0xf]  ;;  %s39_s0 = smov 12  }
   0x2   :  { %6 = vst [vmem:[#allocation1] sm:$0xf] %v5_v0 }
   0x9   :  { %v11_v1 = vld [vmem:[#allocation1 + $0x3] sm:$0x1]   ;;  %v23_v2 = vld [vmem:[#allocation1 + $0x1] sm:$0x1]   ;;  %v7_v3 = vld [vmem:[#allocation1] sm:$0x1]  }
   0xa   :  { %12 = vrot.lane.b32.xlu0 %v11_v1, %s39_s0  ;;  %24 = vrot.lane.b32.xlu1 %v23_v2, %s40_s8  ;;  %v17_v4 = vld [vmem:[#allocation1 + $0x2] sm:$0x1]   ;;  %9 = vst.msk [vmem:[#allocation0] sm:$0x1] %vm8_vm0, %v7_v3  }
   0xe   :  { %18 = vrot.lane.b32.xlu0 %v17_v4, %s41_s9 }
  0x7c   :  { %v13_v5 = vpop.permute.xlu0 %12   ;;  %v25_v6 = vpop.permute.xlu1 %24  }
  0x7d   :  { %15 = vst.msk [vmem:[#allocation0] sm:$0x1] %vm14_vm1, %v13_v5  }
  0x80   :  { %v19_v7 = vpop.permute.xlu0 %18  }
  0x81   :  { %21 = vst.msk [vmem:[#allocation0] sm:$0x1] %vm20_vm2, %v19_v7  }
  0x82   :  { %27 = vst.msk [vmem:[#allocation0] sm:$0x1] %vm26_vm3, %v25_v6  }
  0x89   :  { %v32_v8 = vld [vmem:[#allocation0] sm:$0x1] }
  0x8a   :  { %35 = vst [vmem:[%s59_s1] sm:$0x1] %v32_v8 }

// kernel: upsample_block_forward.5
= control target key start
LH: loop header
LB: loop body
LE: loop exit
PB: predicated region body
PF: predicated region fallthrough
CT: control target
= control target key end

     0   :  { %vm75_vm0 = vcmask 588800   ;;  %s627_s1 = inlined_call_operand.vmem [shape: f32[72,128], index: 1, kind: input, shape index: {}]   ;;  %s628_s0 = inlined_call_operand.vmem [shape: f32[128,72], index: 0, kind: input, shape index: {}]   ;;  %s629_s2 = inlined_call_operand.vmem [shape: f32[1,128], index: 2, kind: input, shape index: {}]   ;;  %s630_s3 = inlined_call_operand.vmem [shape: f32[128,128], index: 3, kind: output, shape index: {}]  }
   0x1   :  { %v74_v0 = vld [vmem:[%s627_s1 + $0x40] sm:$0xff]  ;;  %v73_v1 = vld [vmem:[%s627_s1 + $0x38] sm:$0xff]  ;;  %v72_v2 = vld [vmem:[%s627_s1 + $0x30] sm:$0xff] }
   0x2   :  { %405 = vmatprep.subr.mxu0 %v74_v0  ;;  %447 = vmatprep.subr.mxu1 %v74_v0  ;;  %v71_v3 = vld [vmem:[%s627_s1 + $0x28] sm:$0xff]  ;;  %v70_v4 = vld [vmem:[%s627_s1 + $0x20] sm:$0xff]  ;;  %v69_v5 = vld [vmem:[%s627_s1 + $0x18] sm:$0xff] }
   0x3   :  { %406 = vmatpush3.msra.mxu0 %v74_v0  ;;  %456 = vmatpush3.msra.mxu1 %v74_v0  ;;  %v68_v6 = vld [vmem:[%s627_s1 + $0x10] sm:$0xff]  ;;  %v67_v7 = vld [vmem:[%s627_s1 + $0x8] sm:$0xff]  ;;  %v66_v8 = vld [vmem:[%s627_s1] sm:$0xff] }
   0x4   :  { %407 = vmatprep.subr.mxu0 %v73_v1  ;;  %448 = vmatprep.subr.mxu1 %v73_v1  ;;  %v50_v9 = vld [vmem:[%s628_s0] sm:$0xff]  ;;  %v51_v11 = vld [vmem:[%s628_s0 + $0x8] sm:$0xff]  ;;  %v52_v13 = vld [vmem:[%s628_s0 + $0x10] sm:$0xff] }
   0x5   :  { %408 = vmatpush3.msra.mxu0 %v73_v1  ;;  %457 = vmatpush3.msra.mxu1 %v73_v1  ;;  %v58_v10 = vld [vmem:[%s628_s0 + $0x40] sm:$0xff]  ;;  %v59_v12 = vld [vmem:[%s628_s0 + $0x48] sm:$0xff]  ;;  %v60_v14 = vld [vmem:[%s628_s0 + $0x50] sm:$0xff] }
   0x6   :  { %409 = vmatprep.subr.mxu0 %v72_v2  ;;  %449 = vmatprep.subr.mxu1 %v72_v2  ;;  %v53_v15 = vld [vmem:[%s628_s0 + $0x18] sm:$0xff]  ;;  %v54_v17 = vld [vmem:[%s628_s0 + $0x20] sm:$0xff]  ;;  %v55_v19 = vld [vmem:[%s628_s0 + $0x28] sm:$0xff] }
   0x7   :  { %410 = vmatpush3.msra.mxu0 %v72_v2  ;;  %458 = vmatpush3.msra.mxu1 %v72_v2  ;;  %v61_v16 = vld [vmem:[%s628_s0 + $0x58] sm:$0xff]  ;;  %v62_v18 = vld [vmem:[%s628_s0 + $0x60] sm:$0xff]  ;;  %v63_v20 = vld [vmem:[%s628_s0 + $0x68] sm:$0xff] }
   0x8   :  { %411 = vmatprep.subr.mxu0 %v71_v3  ;;  %450 = vmatprep.subr.mxu1 %v71_v3  ;;  %v56_v21 = vld [vmem:[%s628_s0 + $0x30] sm:$0xff]  ;;  %v57_v23 = vld [vmem:[%s628_s0 + $0x38] sm:$0xff]  ;;  %v379_v25 = vld [vmem:[%s629_s2] ss:$0 sm:$0xff] }
   0x9   :  { %412 = vmatpush3.msra.mxu0 %v71_v3  ;;  %459 = vmatpush3.msra.mxu1 %v71_v3  ;;  %v64_v22 = vld [vmem:[%s628_s0 + $0x70] sm:$0xff]  ;;  %v65_v24 = vld [vmem:[%s628_s0 + $0x78] sm:$0xff] }
   0xa   :  { %413 = vmatprep.subr.mxu0 %v70_v4  ;;  %451 = vmatprep.subr.mxu1 %v70_v4 }
   0xb   :  { %414 = vmatpush3.msra.mxu0 %v70_v4  ;;  %460 = vmatpush3.msra.mxu1 %v70_v4 }
   0xc   :  { %415 = vmatprep.subr.mxu0 %v69_v5  ;;  %452 = vmatprep.subr.mxu1 %v69_v5 }
   0xd   :  { %416 = vmatpush3.msra.mxu0 %v69_v5  ;;  %461 = vmatpush3.msra.mxu1 %v69_v5 }
   0xe   :  { %417 = vmatprep.subr.mxu0 %v68_v6  ;;  %453 = vmatprep.subr.mxu1 %v68_v6 }
   0xf   :  { %418 = vmatpush3.msra.mxu0 %v68_v6  ;;  %462 = vmatpush3.msra.mxu1 %v68_v6 }
  0x10   :  { %419 = vmatprep.subr.mxu0 %v67_v7  ;;  %454 = vmatprep.subr.mxu1 %v67_v7 }
  0x11   :  { %420 = vmatpush3.msra.mxu0 %v67_v7  ;;  %463 = vmatpush3.msra.mxu1 %v67_v7 }
  0x12   :  { %421 = vmatprep.subr.mxu0 %v66_v8  ;;  %455 = vmatprep.subr.mxu1 %v66_v8 }
  0x13   :  { %422 = vmatpush3.msra.mxu0 %v66_v8  ;;  %464 = vmatpush3.msra.mxu1 %v66_v8 }
  0x14   :  { %423 = vmatprep.mubr.msk.f32.mxu0 %vm75_vm0, %v50_v9  ;;  %435 = vmatprep.mubr.msk.f32.mxu1 %vm75_vm0, %v58_v10 }
  0x15   :  { %424 = vmatmul.mubr.msk.f32.vlgmr.msra.gmra.mxu0 %vm75_vm0, %v51_v11  ;;  %436 = vmatmul.mubr.msk.f32.vlgmr.msra.gmra.mxu1 %vm75_vm0, %v59_v12 }
  0x16   :  { %426 = vmatprep.mubr.msk.f32.mxu0 %vm75_vm0, %v52_v13  ;;  %438 = vmatprep.mubr.msk.f32.mxu1 %vm75_vm0, %v60_v14 }
  0x19   :  { %427 = vmatmul.mubr.msk.f32.gmra.mxu0 %vm75_vm0, %v53_v15  ;;  %439 = vmatmul.mubr.msk.f32.gmra.mxu1 %vm75_vm0, %v61_v16 }
  0x1a   :  { %429 = vmatprep.mubr.msk.f32.mxu0 %vm75_vm0, %v54_v17  ;;  %441 = vmatprep.mubr.msk.f32.mxu1 %vm75_vm0, %v62_v18 }
  0x1d   :  { %430 = vmatmul.mubr.msk.f32.gmra.mxu0 %vm75_vm0, %v55_v19  ;;  %442 = vmatmul.mubr.msk.f32.gmra.mxu1 %vm75_vm0, %v63_v20 }
  0x1e   :  { %432 = vmatprep.mubr.msk.f32.mxu0 %vm75_vm0, %v56_v21  ;;  %444 = vmatprep.mubr.msk.f32.mxu1 %vm75_vm0, %v64_v22 }
  0x21   :  { %433 = vmatmul.mubr.msk.f32.gmra.mxu0 %vm75_vm0, %v57_v23  ;;  %445 = vmatmul.mubr.msk.f32.gmra.mxu1 %vm75_vm0, %v65_v24 }
  0xd5   :  { %v425_v26 = vpop.f32.mrf.mxu0  ;;  %v437_v27 = vpop.f32.mrf.mxu1 }
  0xd6   :  { %v328_v28 = vadd.f32 %v425_v26, %v379_v25  ;;  %v336_v29 = vadd.f32 %v437_v27, %v379_v25 }
  0xd7   :  { %v190_v30 = vpop.f32.mrf.mxu0  ;;  %v230_v31 = vpop.f32.mrf.mxu1 }
  0xd8   :  { %344 = vst [vmem:[%s630_s3 + $0x8] sm:$0xff] %v328_v28  ;;  %352 = vst [vmem:[%s630_s3 + $0x48] sm:$0xff] %v336_v29  ;;  %v327_v32 = vadd.f32 %v379_v25, %v190_v30  ;;  %v335_v33 = vadd.f32 %v379_v25, %v230_v31 }
  0xd9   :  { %v428_v34 = vpop.f32.mrf.mxu0  ;;  %v440_v35 = vpop.f32.mrf.mxu1 }
  0xda   :  { %343 = vst [vmem:[%s630_s3] sm:$0xff] %v327_v32  ;;  %351 = vst [vmem:[%s630_s3 + $0x40] sm:$0xff] %v335_v33  ;;  %v330_v36 = vadd.f32 %v428_v34, %v379_v25  ;;  %v338_v37 = vadd.f32 %v440_v35, %v379_v25 }
  0xdb   :  { %v200_v38 = vpop.f32.mrf.mxu0  ;;  %v240_v39 = vpop.f32.mrf.mxu1 }
  0xdc   :  { %346 = vst [vmem:[%s630_s3 + $0x18] sm:$0xff] %v330_v36  ;;  %354 = vst [vmem:[%s630_s3 + $0x58] sm:$0xff] %v338_v37  ;;  %v329_v40 = vadd.f32 %v379_v25, %v200_v38  ;;  %v337_v41 = vadd.f32 %v379_v25, %v240_v39 }
  0xdd   :  { %v431_v42 = vpop.f32.mrf.mxu0  ;;  %v443_v43 = vpop.f32.mrf.mxu1 }
  0xde   :  { %345 = vst [vmem:[%s630_s3 + $0x10] sm:$0xff] %v329_v40  ;;  %353 = vst [vmem:[%s630_s3 + $0x50] sm:$0xff] %v337_v41  ;;  %v332_v44 = vadd.f32 %v431_v42, %v379_v25  ;;  %v340_v45 = vadd.f32 %v443_v43, %v379_v25 }
  0xdf   :  { %v210_v46 = vpop.f32.mrf.mxu0  ;;  %v250_v47 = vpop.f32.mrf.mxu1 }
  0xe0   :  { %348 = vst [vmem:[%s630_s3 + $0x28] sm:$0xff] %v332_v44  ;;  %356 = vst [vmem:[%s630_s3 + $0x68] sm:$0xff] %v340_v45  ;;  %v331_v48 = vadd.f32 %v379_v25, %v210_v46  ;;  %v339_v49 = vadd.f32 %v379_v25, %v250_v47 }
  0xe1   :  { %v434_v50 = vpop.f32.mrf.mxu0  ;;  %v446_v51 = vpop.f32.mrf.mxu1 }
  0xe2   :  { %347 = vst [vmem:[%s630_s3 + $0x20] sm:$0xff] %v331_v48  ;;  %355 = vst [vmem:[%s630_s3 + $0x60] sm:$0xff] %v339_v49  ;;  %v334_v52 = vadd.f32 %v434_v50, %v379_v25  ;;  %v342_v53 = vadd.f32 %v446_v51, %v379_v25 }
  0xe3   :  { %v220_v54 = vpop.f32.mrf.mxu0  ;;  %v260_v55 = vpop.f32.mrf.mxu1 }
  0xe4   :  { %350 = vst [vmem:[%s630_s3 + $0x38] sm:$0xff] %v334_v52  ;;  %358 = vst [vmem:[%s630_s3 + $0x78] sm:$0xff] %v342_v53  ;;  %v333_v56 = vadd.f32 %v379_v25, %v220_v54  ;;  %v341_v57 = vadd.f32 %v379_v25, %v260_v55 }
  0xe6   :  { %349 = vst [vmem:[%s630_s3 + $0x30] sm:$0xff] %v333_v56  ;;  %357 = vst [vmem:[%s630_s3 + $0x70] sm:$0xff] %v341_v57 }

// kernel: upsample_block_forward.7
= control target key start
LH: loop header
LB: loop body
LE: loop exit
PB: predicated region body
PF: predicated region fallthrough
CT: control target
= control target key end

     0   :  { %s896_s0 = inlined_call_operand.vmem [shape: f32[512,128], index: 0, kind: input, shape index: {}]   ;;  %s897_s1 = inlined_call_operand.vmem [shape: f32[1,128], index: 1, kind: input, shape index: {}]   ;;  %s898_s2 = inlined_call_operand.vmem [shape: f32[1,128], index: 2, kind: input, shape index: {}]   ;;  %s899_s3 = inlined_call_operand.vmem [shape: f32[512,128], index: 3, kind: output, shape index: {}]  }
   0x1   :  { %v14_v0 = vld [vmem:[%s896_s0] sm:$0xff]  ;;  %v15_v4 = vld [vmem:[%s896_s0 + $0x8] sm:$0xff]  ;;  %v16_v5 = vld [vmem:[%s896_s0 + $0x10] sm:$0xff] }
   0x2   :  { %v380_v1 = vld [vmem:[%s897_s1] ss:$0 sm:$0xff]  ;;  %v17_v6 = vld [vmem:[%s896_s0 + $0x18] sm:$0xff]  ;;  %v19_v11 = vld [vmem:[%s896_s0 + $0x28] sm:$0xff] }
   0x3   :  { %v385_v2 = vld [vmem:[%s898_s2] ss:$0 sm:$0xff]  ;;  %v85_v3 = vmul.f32 %v380_v1, %v14_v0  ;;  %v86_v7 = vmul.f32 %v380_v1, %v15_v4  ;;  %v87_v8 = vmul.f32 %v380_v1, %v16_v5  ;;  %v88_v9 = vmul.f32 %v380_v1, %v17_v6  ;;  %v20_v12 = vld [vmem:[%s896_s0 + $0x30] sm:$0xff]  ;;  %v21_v17 = vld [vmem:[%s896_s0 + $0x38] sm:$0xff] }
   0x4   :  { %v18_v10 = vld [vmem:[%s896_s0 + $0x20] sm:$0xff]  ;;  %v90_v15 = vmul.f32 %v380_v1, %v19_v11  ;;  %v91_v16 = vmul.f32 %v380_v1, %v20_v12  ;;  %v92_v21 = vmul.f32 %v380_v1, %v21_v17  ;;  %v23_v27 = vld [vmem:[%s896_s0 + $0x48] sm:$0xff]  ;;  %v24_v28 = vld [vmem:[%s896_s0 + $0x50] sm:$0xff] }
   0x5   :  { %v156_v13 = vadd.f32 %v385_v2, %v85_v3  ;;  %v89_v14 = vmul.f32 %v380_v1, %v18_v10  ;;  %v157_v18 = vadd.f32 %v385_v2, %v86_v7  ;;  %v158_v19 = vadd.f32 %v385_v2, %v87_v8  ;;  %v22_v22 = vld [vmem:[%s896_s0 + $0x40] sm:$0xff]  ;;  %v25_v29 = vld [vmem:[%s896_s0 + $0x58] sm:$0xff]  ;;  %v27_v35 = vld [vmem:[%s896_s0 + $0x68] sm:$0xff] }
   0x6   :  { %v159_v20 = vadd.f32 %v385_v2, %v88_v9  ;;  %v161_v25 = vadd.f32 %v385_v2, %v90_v15  ;;  %v162_v26 = vadd.f32 %v385_v2, %v91_v16  ;;  %v163_v33 = vadd.f32 %v385_v2, %v92_v21  ;;  %v26_v34 = vld [vmem:[%s896_s0 + $0x60] sm:$0xff]  ;;  %v28_v36 = vld [vmem:[%s896_s0 + $0x70] sm:$0xff]  ;;  %v29_v41 = vld [vmem:[%s896_s0 + $0x78] sm:$0xff] }
   0x7   :  { %v220_v23 = vmax.f32 %v156_v13, 0.0  ;;  %v160_v24 = vadd.f32 %v385_v2, %v89_v14  ;;  %v221_v30 = vmax.f32 %v157_v18, 0.0  ;;  %v222_v31 = vmax.f32 %v158_v19, 0.0  ;;  %v30_v54 = vld [vmem:[%s896_s0 + $0x80] sm:$0xff]  ;;  %v31_v59 = vld [vmem:[%s896_s0 + $0x88] sm:$0xff]  ;;  %v32_v60 = vld [vmem:[%s896_s0 + $0x90] sm:$0xff] }
   0x8   :  { %v223_v32 = vmax.f32 %v159_v20, 0.0  ;;  %v225_v38 = vmax.f32 %v161_v25, 0.0  ;;  %v226_v39 = vmax.f32 %v162_v26, 0.0  ;;  %v93_v40 = vmul.f32 %v380_v1, %v22_v22  ;;  %v33_v61 = vld [vmem:[%s896_s0 + $0x98] sm:$0xff]  ;;  %v34_v4 = vld [vmem:[%s896_s0 + $0xa0] sm:$0xff]  ;;  %v35_v5 = vld [vmem:[%s896_s0 + $0xa8] sm:$0xff] }
   0x9   :  { %284 = vst [vmem:[%s899_s3] sm:$0xff] %v220_v23  ;;  %v224_v37 = vmax.f32 %v160_v24, 0.0  ;;  %285 = vst [vmem:[%s899_s3 + $0x8] sm:$0xff] %v221_v30  ;;  %v227_v42 = vmax.f32 %v163_v33, 0.0  ;;  %v94_v43 = vmul.f32 %v380_v1, %v23_v27  ;;  %v95_v44 = vmul.f32 %v380_v1, %v24_v28  ;;  %v36_v6 = vld [vmem:[%s896_s0 + $0xb0] sm:$0xff]  ;;  %v37_v11 = vld [vmem:[%s896_s0 + $0xb8] sm:$0xff] }
   0xa   :  { %286 = vst [vmem:[%s899_s3 + $0x10] sm:$0xff] %v222_v31  ;;  %287 = vst [vmem:[%s899_s3 + $0x18] sm:$0xff] %v223_v32  ;;  %v96_v45 = vmul.f32 %v380_v1, %v25_v29  ;;  %v164_v46 = vadd.f32 %v385_v2, %v93_v40  ;;  %v97_v47 = vmul.f32 %v380_v1, %v26_v34  ;;  %v38_v24 = vld [vmem:[%s896_s0 + $0xc0] sm:$0xff]  ;;  %v39_v29 = vld [vmem:[%s896_s0 + $0xc8] sm:$0xff] }
   0xb   :  { %288 = vst [vmem:[%s899_s3 + $0x20] sm:$0xff] %v224_v37  ;;  %289 = vst [vmem:[%s899_s3 + $0x28] sm:$0xff] %v225_v38  ;;  %v98_v48 = vmul.f32 %v380_v1, %v27_v35  ;;  %v99_v49 = vmul.f32 %v380_v1, %v28_v36  ;;  %v165_v50 = vadd.f32 %v385_v2, %v94_v43  ;;  %v40_v30 = vld [vmem:[%s896_s0 + $0xd0] sm:$0xff]  ;;  %v41_v31 = vld [vmem:[%s896_s0 + $0xd8] sm:$0xff] }
   0xc   :  { %290 = vst [vmem:[%s899_s3 + $0x30] sm:$0xff] %v226_v39  ;;  %291 = vst [vmem:[%s899_s3 + $0x38] sm:$0xff] %v227_v42  ;;  %v166_v51 = vadd.f32 %v385_v2, %v95_v44  ;;  %v167_v52 = vadd.f32 %v385_v2, %v96_v45  ;;  %v100_v53 = vmul.f32 %v380_v1, %v29_v41  ;;  %v228_v55 = vmax.f32 %v164_v46, 0.0  ;;  %v42_v36 = vld [vmem:[%s896_s0 + $0xe0] sm:$0xff]  ;;  %v43_v37 = vld [vmem:[%s896_s0 + $0xe8] sm:$0xff] }
   0xd   :  { %v168_v56 = vadd.f32 %v385_v2, %v97_v47  ;;  %v169_v57 = vadd.f32 %v385_v2, %v98_v48  ;;  %v170_v58 = vadd.f32 %v385_v2, %v99_v49  ;;  %v229_v62 = vmax.f32 %v165_v50, 0.0  ;;  %v44_v38 = vld [vmem:[%s896_s0 + $0xf0] sm:$0xff]  ;;  %v45_v43 = vld [vmem:[%s896_s0 + $0xf8] sm:$0xff] }
   0xe   :  { %v230_v63 = vmax.f32 %v166_v51, 0.0  ;;  %v231_v0 = vmax.f32 %v167_v52, 0.0  ;;  %v171_v3 = vadd.f32 %v385_v2, %v100_v53  ;;  %292 = vst [vmem:[%s899_s3 + $0x40] sm:$0xff] %v228_v55  ;;  %v101_v10 = vmul.f32 %v380_v1, %v30_v54 }
   0xf   :  { %v232_v7 = vmax.f32 %v168_v56, 0.0  ;;  %v233_v8 = vmax.f32 %v169_v57, 0.0  ;;  %v234_v9 = vmax.f32 %v170_v58, 0.0  ;;  %293 = vst [vmem:[%s899_s3 + $0x48] sm:$0xff] %v229_v62  ;;  %v102_v13 = vmul.f32 %v380_v1, %v31_v59  ;;  %v46_v56 = vld [vmem:[%s896_s0 + $0x100] sm:$0xff]  ;;  %v48_v62 = vld [vmem:[%s896_s0 + $0x110] sm:$0xff] }
  0x10   :  { %294 = vst [vmem:[%s899_s3 + $0x50] sm:$0xff] %v230_v63  ;;  %295 = vst [vmem:[%s899_s3 + $0x58] sm:$0xff] %v231_v0  ;;  %v235_v12 = vmax.f32 %v171_v3, 0.0  ;;  %v103_v14 = vmul.f32 %v380_v1, %v32_v60  ;;  %v104_v15 = vmul.f32 %v380_v1, %v33_v61  ;;  %v172_v16 = vadd.f32 %v385_v2, %v101_v10  ;;  %v47_v61 = vld [vmem:[%s896_s0 + $0x108] sm:$0xff]  ;;  %v49_v63 = vld [vmem:[%s896_s0 + $0x118] sm:$0xff] }
  0x11   :  { %296 = vst [vmem:[%s899_s3 + $0x60] sm:$0xff] %v232_v7  ;;  %297 = vst [vmem:[%s899_s3 + $0x68] sm:$0xff] %v233_v8  ;;  %v105_v17 = vmul.f32 %v380_v1, %v34_v4  ;;  %v106_v18 = vmul.f32 %v380_v1, %v35_v5  ;;  %v107_v19 = vmul.f32 %v380_v1, %v36_v6  ;;  %v50_v6 = vld [vmem:[%s896_s0 + $0x120] sm:$0xff]  ;;  %v51_v7 = vld [vmem:[%s896_s0 + $0x128] sm:$0xff] }
  0x12   :  { %298 = vst [vmem:[%s899_s3 + $0x70] sm:$0xff] %v234_v9  ;;  %299 = vst [vmem:[%s899_s3 + $0x78] sm:$0xff] %v235_v12  ;;  %v173_v20 = vadd.f32 %v385_v2, %v102_v13  ;;  %v174_v21 = vadd.f32 %v385_v2, %v103_v14  ;;  %v175_v22 = vadd.f32 %v385_v2, %v104_v15  ;;  %v236_v25 = vmax.f32 %v172_v16, 0.0  ;;  %v52_v8 = vld [vmem:[%s896_s0 + $0x130] sm:$0xff]  ;;  %v53_v13 = vld [vmem:[%s896_s0 + $0x138] sm:$0xff] }
  0x13   :  { %v108_v23 = vmul.f32 %v380_v1, %v37_v11  ;;  %v176_v26 = vadd.f32 %v385_v2, %v105_v17  ;;  %v177_v27 = vadd.f32 %v385_v2, %v106_v18  ;;  %v178_v28 = vadd.f32 %v385_v2, %v107_v19 }
  0x14   :  { %v237_v32 = vmax.f32 %v173_v20, 0.0  ;;  %v238_v33 = vmax.f32 %v174_v21, 0.0  ;;  %v239_v34 = vmax.f32 %v175_v22, 0.0  ;;  %300 = vst [vmem:[%s899_s3 + $0x80] sm:$0xff] %v236_v25  ;;  %v109_v42 = vmul.f32 %v380_v1, %v38_v24 }
  0x15   :  { %v179_v35 = vadd.f32 %v385_v2, %v108_v23  ;;  %v240_v39 = vmax.f32 %v176_v26, 0.0  ;;  %v241_v40 = vmax.f32 %v177_v27, 0.0  ;;  %v242_v41 = vmax.f32 %v178_v28, 0.0  ;;  %v54_v26 = vld [vmem:[%s896_s0 + $0x140] sm:$0xff] }
  0x16   :  { %301 = vst [vmem:[%s899_s3 + $0x88] sm:$0xff] %v237_v32  ;;  %302 = vst [vmem:[%s899_s3 + $0x90] sm:$0xff] %v238_v33  ;;  %v110_v45 = vmul.f32 %v380_v1, %v39_v29  ;;  %v111_v46 = vmul.f32 %v380_v1, %v40_v30  ;;  %v112_v47 = vmul.f32 %v380_v1, %v41_v31  ;;  %v55_v31 = vld [vmem:[%s896_s0 + $0x148] sm:$0xff]  ;;  %v56_v32 = vld [vmem:[%s896_s0 + $0x150] sm:$0xff] }
  0x17   :  { %303 = vst [vmem:[%s899_s3 + $0x98] sm:$0xff] %v239_v34  ;;  %v243_v44 = vmax.f32 %v179_v35, 0.0  ;;  %304 = vst [vmem:[%s899_s3 + $0xa0] sm:$0xff] %v240_v39  ;;  %v180_v48 = vadd.f32 %v385_v2, %v109_v42  ;;  %v113_v49 = vmul.f32 %v380_v1, %v42_v36  ;;  %v114_v50 = vmul.f32 %v380_v1, %v43_v37  ;;  %v57_v33 = vld [vmem:[%s896_s0 + $0x158] sm:$0xff]  ;;  %v59_v39 = vld [vmem:[%s896_s0 + $0x168] sm:$0xff] }
  0x18   :  { %305 = vst [vmem:[%s899_s3 + $0xa8] sm:$0xff] %v241_v40  ;;  %306 = vst [vmem:[%s899_s3 + $0xb0] sm:$0xff] %v242_v41  ;;  %v115_v51 = vmul.f32 %v380_v1, %v44_v38  ;;  %v181_v52 = vadd.f32 %v385_v2, %v110_v45  ;;  %v182_v53 = vadd.f32 %v385_v2, %v111_v46  ;;  %v58_v38 = vld [vmem:[%s896_s0 + $0x160] sm:$0xff]  ;;  %v60_v40 = vld [vmem:[%s896_s0 + $0x170] sm:$0xff] }
  0x19   :  { %307 = vst [vmem:[%s899_s3 + $0xb8] sm:$0xff] %v243_v44  ;;  %v183_v54 = vadd.f32 %v385_v2, %v112_v47  ;;  %v116_v55 = vmul.f32 %v380_v1, %v45_v43  ;;  %v244_v57 = vmax.f32 %v180_v48, 0.0  ;;  %v184_v58 = vadd.f32 %v385_v2, %v113_v49  ;;  %v61_v45 = vld [vmem:[%s896_s0 + $0x178] sm:$0xff] }
  0x1a   :  { %v185_v59 = vadd.f32 %v385_v2, %v114_v50  ;;  %v186_v60 = vadd.f32 %v385_v2, %v115_v51  ;;  %v245_v0 = vmax.f32 %v181_v52, 0.0  ;;  %v246_v3 = vmax.f32 %v182_v53, 0.0 }
  0x1b   :  { %v247_v4 = vmax.f32 %v183_v54, 0.0  ;;  %v187_v5 = vadd.f32 %v385_v2, %v116_v55  ;;  %308 = vst [vmem:[%s899_s3 + $0xc0] sm:$0xff] %v244_v57  ;;  %v248_v9 = vmax.f32 %v184_v58, 0.0  ;;  %v117_v12 = vmul.f32 %v380_v1, %v46_v56  ;;  %v62_v58 = vld [vmem:[%s896_s0 + $0x180] sm:$0xff] }
  0x1c   :  { %v249_v10 = vmax.f32 %v185_v59, 0.0  ;;  %v250_v11 = vmax.f32 %v186_v60, 0.0  ;;  %309 = vst [vmem:[%s899_s3 + $0xc8] sm:$0xff] %v245_v0  ;;  %310 = vst [vmem:[%s899_s3 + $0xd0] sm:$0xff] %v246_v3  ;;  %v118_v15 = vmul.f32 %v380_v1, %v47_v61  ;;  %v119_v16 = vmul.f32 %v380_v1, %v48_v62  ;;  %v64_v0 = vld [vmem:[%s896_s0 + $0x190] sm:$0xff]  ;;  %v65_v3 = vld [vmem:[%s896_s0 + $0x198] sm:$0xff] }
  0x1d   :  { %311 = vst [vmem:[%s899_s3 + $0xd8] sm:$0xff] %v247_v4  ;;  %v251_v14 = vmax.f32 %v187_v5, 0.0  ;;  %v120_v17 = vmul.f32 %v380_v1, %v49_v63  ;;  %312 = vst [vmem:[%s899_s3 + $0xe0] sm:$0xff] %v248_v9  ;;  %v188_v18 = vadd.f32 %v385_v2, %v117_v12  ;;  %v121_v19 = vmul.f32 %v380_v1, %v50_v6  ;;  %v63_v63 = vld [vmem:[%s896_s0 + $0x188] sm:$0xff] }
  0x1e   :  { %313 = vst [vmem:[%s899_s3 + $0xe8] sm:$0xff] %v249_v10  ;;  %314 = vst [vmem:[%s899_s3 + $0xf0] sm:$0xff] %v250_v11  ;;  %v122_v20 = vmul.f32 %v380_v1, %v51_v7  ;;  %v123_v21 = vmul.f32 %v380_v1, %v52_v8  ;;  %v189_v22 = vadd.f32 %v385_v2, %v118_v15  ;;  %v66_v8 = vld [vmem:[%s896_s0 + $0x1a0] sm:$0xff]  ;;  %v67_v9 = vld [vmem:[%s896_s0 + $0x1a8] sm:$0xff] }
  0x1f   :  { %315 = vst [vmem:[%s899_s3 + $0xf8] sm:$0xff] %v251_v14  ;;  %v190_v23 = vadd.f32 %v385_v2, %v119_v16  ;;  %v191_v24 = vadd.f32 %v385_v2, %v120_v17  ;;  %v124_v25 = vmul.f32 %v380_v1, %v53_v13  ;;  %v252_v27 = vmax.f32 %v188_v18, 0.0  ;;  %v68_v10 = vld [vmem:[%s896_s0 + $0x1b0] sm:$0xff]  ;;  %v69_v15 = vld [vmem:[%s896_s0 + $0x1b8] sm:$0xff] }
  0x20   :  { %v192_v28 = vadd.f32 %v385_v2, %v121_v19  ;;  %v193_v29 = vadd.f32 %v385_v2, %v122_v20  ;;  %v194_v30 = vadd.f32 %v385_v2, %v123_v21  ;;  %v253_v34 = vmax.f32 %v189_v22, 0.0 }
  0x21   :  { %v254_v35 = vmax.f32 %v190_v23, 0.0  ;;  %v255_v36 = vmax.f32 %v191_v24, 0.0  ;;  %v195_v37 = vadd.f32 %v385_v2, %v124_v25  ;;  %316 = vst [vmem:[%s899_s3 + $0x100] sm:$0xff] %v252_v27  ;;  %v125_v44 = vmul.f32 %v380_v1, %v54_v26 }
  0x22   :  { %v256_v41 = vmax.f32 %v192_v28, 0.0  ;;  %v257_v42 = vmax.f32 %v193_v29, 0.0  ;;  %v258_v43 = vmax.f32 %v194_v30, 0.0  ;;  %317 = vst [vmem:[%s899_s3 + $0x108] sm:$0xff] %v253_v34  ;;  %v126_v47 = vmul.f32 %v380_v1, %v55_v31  ;;  %v70_v28 = vld [vmem:[%s896_s0 + $0x1c0] sm:$0xff]  ;;  %v72_v34 = vld [vmem:[%s896_s0 + $0x1d0] sm:$0xff] }
  0x23   :  { %318 = vst [vmem:[%s899_s3 + $0x110] sm:$0xff] %v254_v35  ;;  %319 = vst [vmem:[%s899_s3 + $0x118] sm:$0xff] %v255_v36  ;;  %v259_v46 = vmax.f32 %v195_v37, 0.0  ;;  %v127_v48 = vmul.f32 %v380_v1, %v56_v32  ;;  %v128_v49 = vmul.f32 %v380_v1, %v57_v33  ;;  %v196_v50 = vadd.f32 %v385_v2, %v125_v44  ;;  %v71_v33 = vld [vmem:[%s896_s0 + $0x1c8] sm:$0xff]  ;;  %v73_v35 = vld [vmem:[%s896_s0 + $0x1d8] sm:$0xff] }
  0x24   :  { %320 = vst [vmem:[%s899_s3 + $0x120] sm:$0xff] %v256_v41  ;;  %321 = vst [vmem:[%s899_s3 + $0x128] sm:$0xff] %v257_v42  ;;  %v129_v51 = vmul.f32 %v380_v1, %v58_v38  ;;  %v130_v52 = vmul.f32 %v380_v1, %v59_v39  ;;  %v131_v53 = vmul.f32 %v380_v1, %v60_v40  ;;  %v74_v40 = vld [vmem:[%s896_s0 + $0x1e0] sm:$0xff]  ;;  %v75_v41 = vld [vmem:[%s896_s0 + $0x1e8] sm:$0xff] }
  0x25   :  { %322 = vst [vmem:[%s899_s3 + $0x130] sm:$0xff] %v258_v43  ;;  %323 = vst [vmem:[%s899_s3 + $0x138] sm:$0xff] %v259_v46  ;;  %v197_v54 = vadd.f32 %v385_v2, %v126_v47  ;;  %v198_v55 = vadd.f32 %v385_v2, %v127_v48  ;;  %v199_v56 = vadd.f32 %v385_v2, %v128_v49  ;;  %v260_v59 = vmax.f32 %v196_v50, 0.0  ;;  %v76_v42 = vld [vmem:[%s896_s0 + $0x1f0] sm:$0xff]  ;;  %v77_v47 = vld [vmem:[%s896_s0 + $0x1f8] sm:$0xff] }
  0x26   :  { %v132_v57 = vmul.f32 %v380_v1, %v61_v45  ;;  %v200_v60 = vadd.f32 %v385_v2, %v129_v51  ;;  %v201_v61 = vadd.f32 %v385_v2, %v130_v52  ;;  %v202_v62 = vadd.f32 %v385_v2, %v131_v53 }
  0x27   :  { %v261_v4 = vmax.f32 %v197_v54, 0.0  ;;  %v262_v5 = vmax.f32 %v198_v55, 0.0  ;;  %v263_v6 = vmax.f32 %v199_v56, 0.0  ;;  %324 = vst [vmem:[%s899_s3 + $0x140] sm:$0xff] %v260_v59  ;;  %v133_v14 = vmul.f32 %v380_v1, %v62_v58 }
  0x28   :  { %v203_v7 = vadd.f32 %v385_v2, %v132_v57  ;;  %v264_v11 = vmax.f32 %v200_v60, 0.0  ;;  %v265_v12 = vmax.f32 %v201_v61, 0.0  ;;  %v266_v13 = vmax.f32 %v202_v62, 0.0 }
  0x29   :  { %325 = vst [vmem:[%s899_s3 + $0x148] sm:$0xff] %v261_v4  ;;  %326 = vst [vmem:[%s899_s3 + $0x150] sm:$0xff] %v262_v5  ;;  %v134_v17 = vmul.f32 %v380_v1, %v63_v63  ;;  %v135_v18 = vmul.f32 %v380_v1, %v64_v0  ;;  %v136_v19 = vmul.f32 %v380_v1, %v65_v3 }
  0x2a   :  { %327 = vst [vmem:[%s899_s3 + $0x158] sm:$0xff] %v263_v6  ;;  %v267_v16 = vmax.f32 %v203_v7, 0.0  ;;  %328 = vst [vmem:[%s899_s3 + $0x160] sm:$0xff] %v264_v11  ;;  %v204_v20 = vadd.f32 %v385_v2, %v133_v14  ;;  %v137_v21 = vmul.f32 %v380_v1, %v66_v8  ;;  %v138_v22 = vmul.f32 %v380_v1, %v67_v9 }
  0x2b   :  { %329 = vst [vmem:[%s899_s3 + $0x168] sm:$0xff] %v265_v12  ;;  %330 = vst [vmem:[%s899_s3 + $0x170] sm:$0xff] %v266_v13  ;;  %v139_v23 = vmul.f32 %v380_v1, %v68_v10  ;;  %v205_v24 = vadd.f32 %v385_v2, %v134_v17  ;;  %v206_v25 = vadd.f32 %v385_v2, %v135_v18 }
  0x2c   :  { %331 = vst [vmem:[%s899_s3 + $0x178] sm:$0xff] %v267_v16  ;;  %v207_v26 = vadd.f32 %v385_v2, %v136_v19  ;;  %v140_v27 = vmul.f32 %v380_v1, %v69_v15  ;;  %v268_v29 = vmax.f32 %v204_v20, 0.0  ;;  %v208_v30 = vadd.f32 %v385_v2, %v137_v21 }
  0x2d   :  { %v209_v31 = vadd.f32 %v385_v2, %v138_v22  ;;  %v210_v32 = vadd.f32 %v385_v2, %v139_v23  ;;  %v269_v36 = vmax.f32 %v205_v24, 0.0  ;;  %v270_v37 = vmax.f32 %v206_v25, 0.0 }
  0x2e   :  { %v271_v38 = vmax.f32 %v207_v26, 0.0  ;;  %v211_v39 = vadd.f32 %v385_v2, %v140_v27  ;;  %332 = vst [vmem:[%s899_s3 + $0x180] sm:$0xff] %v268_v29  ;;  %v272_v43 = vmax.f32 %v208_v30, 0.0  ;;  %v141_v46 = vmul.f32 %v380_v1, %v70_v28 }
  0x2f   :  { %v273_v44 = vmax.f32 %v209_v31, 0.0  ;;  %v274_v45 = vmax.f32 %v210_v32, 0.0  ;;  %333 = vst [vmem:[%s899_s3 + $0x188] sm:$0xff] %v269_v36  ;;  %334 = vst [vmem:[%s899_s3 + $0x190] sm:$0xff] %v270_v37  ;;  %v142_v49 = vmul.f32 %v380_v1, %v71_v33  ;;  %v143_v50 = vmul.f32 %v380_v1, %v72_v34 }
  0x30   :  { %335 = vst [vmem:[%s899_s3 + $0x198] sm:$0xff] %v271_v38  ;;  %v275_v48 = vmax.f32 %v211_v39, 0.0  ;;  %v144_v51 = vmul.f32 %v380_v1, %v73_v35  ;;  %336 = vst [vmem:[%s899_s3 + $0x1a0] sm:$0xff] %v272_v43  ;;  %v212_v52 = vadd.f32 %v385_v2, %v141_v46  ;;  %v145_v53 = vmul.f32 %v380_v1, %v74_v40 }
  0x31   :  { %337 = vst [vmem:[%s899_s3 + $0x1a8] sm:$0xff] %v273_v44  ;;  %338 = vst [vmem:[%s899_s3 + $0x1b0] sm:$0xff] %v274_v45  ;;  %v146_v54 = vmul.f32 %v380_v1, %v75_v41  ;;  %v147_v55 = vmul.f32 %v380_v1, %v76_v42  ;;  %v213_v56 = vadd.f32 %v385_v2, %v142_v49 }
  0x32   :  { %339 = vst [vmem:[%s899_s3 + $0x1b8] sm:$0xff] %v275_v48  ;;  %v214_v57 = vadd.f32 %v385_v2, %v143_v50  ;;  %v215_v58 = vadd.f32 %v385_v2, %v144_v51  ;;  %v148_v59 = vmul.f32 %v380_v1, %v77_v47  ;;  %v276_v60 = vmax.f32 %v212_v52, 0.0 }
  0x33   :  { %v216_v61 = vadd.f32 %v385_v2, %v145_v53  ;;  %v217_v62 = vadd.f32 %v385_v2, %v146_v54  ;;  %v218_v63 = vadd.f32 %v385_v2, %v147_v55  ;;  %v277_v0 = vmax.f32 %v213_v56, 0.0 }
  0x34   :  { %v278_v3 = vmax.f32 %v214_v57, 0.0  ;;  %v279_v4 = vmax.f32 %v215_v58, 0.0  ;;  %v219_v5 = vadd.f32 %v385_v2, %v148_v59  ;;  %340 = vst [vmem:[%s899_s3 + $0x1c0] sm:$0xff] %v276_v60 }
  0x35   :  { %v280_v6 = vmax.f32 %v216_v61, 0.0  ;;  %v281_v7 = vmax.f32 %v217_v62, 0.0  ;;  %v282_v8 = vmax.f32 %v218_v63, 0.0  ;;  %341 = vst [vmem:[%s899_s3 + $0x1c8] sm:$0xff] %v277_v0 }
  0x36   :  { %342 = vst [vmem:[%s899_s3 + $0x1d0] sm:$0xff] %v278_v3  ;;  %343 = vst [vmem:[%s899_s3 + $0x1d8] sm:$0xff] %v279_v4  ;;  %v283_v1 = vmax.f32 %v219_v5, 0.0 }
  0x37   :  { %344 = vst [vmem:[%s899_s3 + $0x1e0] sm:$0xff] %v280_v6  ;;  %345 = vst [vmem:[%s899_s3 + $0x1e8] sm:$0xff] %v281_v7 }
  0x38   :  { %346 = vst [vmem:[%s899_s3 + $0x1f0] sm:$0xff] %v282_v8  ;;  %347 = vst [vmem:[%s899_s3 + $0x1f8] sm:$0xff] %v283_v1 }

// kernel: upsample_block_forward.6
= control target key start
LH: loop header
LB: loop body
LE: loop exit
PB: predicated region body
PF: predicated region fallthrough
CT: control target
= control target key end

     0   :  { %vm219_vm0 = vcmask 588800   ;;  %s1965_s1 = inlined_call_operand.vmem [shape: f32[72,128], index: 1, kind: input, shape index: {}]   ;;  %s1966_s0 = inlined_call_operand.vmem [shape: f32[512,72], index: 0, kind: input, shape index: {}]   ;;  %s1967_s2 = inlined_call_operand.vmem [shape: f32[1,128], index: 2, kind: input, shape index: {}]   ;;  %s1968_s3 = inlined_call_operand.vmem [shape: f32[512,128], index: 3, kind: output, shape index: {}]  }
   0x1   :  { %v218_v0 = vld [vmem:[%s1965_s1 + $0x40] sm:$0xff]  ;;  %v217_v1 = vld [vmem:[%s1965_s1 + $0x38] sm:$0xff]  ;;  %v216_v2 = vld [vmem:[%s1965_s1 + $0x30] sm:$0xff] }
   0x2   :  { %1269 = vmatprep.subr.mxu0 %v218_v0  ;;  %1383 = vmatprep.subr.mxu1 %v218_v0  ;;  %v215_v3 = vld [vmem:[%s1965_s1 + $0x28] sm:$0xff]  ;;  %v214_v4 = vld [vmem:[%s1965_s1 + $0x20] sm:$0xff]  ;;  %v213_v5 = vld [vmem:[%s1965_s1 + $0x18] sm:$0xff] }
   0x3   :  { %1270 = vmatpush3.msra.mxu0 %v218_v0  ;;  %1392 = vmatpush3.msra.mxu1 %v218_v0  ;;  %v212_v6 = vld [vmem:[%s1965_s1 + $0x10] sm:$0xff]  ;;  %v211_v7 = vld [vmem:[%s1965_s1 + $0x8] sm:$0xff]  ;;  %v210_v8 = vld [vmem:[%s1965_s1] sm:$0xff] }
   0x4   :  { %1271 = vmatprep.subr.mxu0 %v217_v1  ;;  %1384 = vmatprep.subr.mxu1 %v217_v1  ;;  %v146_v9 = vld [vmem:[%s1966_s0] sm:$0xff]  ;;  %v147_v11 = vld [vmem:[%s1966_s0 + $0x8] sm:$0xff]  ;;  %v148_v13 = vld [vmem:[%s1966_s0 + $0x10] sm:$0xff] }
   0x5   :  { %1272 = vmatpush3.msra.mxu0 %v217_v1  ;;  %1393 = vmatpush3.msra.mxu1 %v217_v1  ;;  %v178_v10 = vld [vmem:[%s1966_s0 + $0x100] sm:$0xff]  ;;  %v179_v12 = vld [vmem:[%s1966_s0 + $0x108] sm:$0xff]  ;;  %v180_v14 = vld [vmem:[%s1966_s0 + $0x110] sm:$0xff] }
   0x6   :  { %1273 = vmatprep.subr.mxu0 %v216_v2  ;;  %1385 = vmatprep.subr.mxu1 %v216_v2  ;;  %v149_v15 = vld [vmem:[%s1966_s0 + $0x18] sm:$0xff]  ;;  %v150_v17 = vld [vmem:[%s1966_s0 + $0x20] sm:$0xff]  ;;  %v151_v19 = vld [vmem:[%s1966_s0 + $0x28] sm:$0xff] }
   0x7   :  { %1274 = vmatpush3.msra.mxu0 %v216_v2  ;;  %1394 = vmatpush3.msra.mxu1 %v216_v2  ;;  %v181_v16 = vld [vmem:[%s1966_s0 + $0x118] sm:$0xff]  ;;  %v182_v18 = vld [vmem:[%s1966_s0 + $0x120] sm:$0xff]  ;;  %v183_v20 = vld [vmem:[%s1966_s0 + $0x128] sm:$0xff] }
   0x8   :  { %1275 = vmatprep.subr.mxu0 %v215_v3  ;;  %1386 = vmatprep.subr.mxu1 %v215_v3  ;;  %v152_v21 = vld [vmem:[%s1966_s0 + $0x30] sm:$0xff]  ;;  %v153_v23 = vld [vmem:[%s1966_s0 + $0x38] sm:$0xff]  ;;  %v154_v25 = vld [vmem:[%s1966_s0 + $0x40] sm:$0xff] }
   0x9   :  { %1276 = vmatpush3.msra.mxu0 %v215_v3  ;;  %1395 = vmatpush3.msra.mxu1 %v215_v3  ;;  %v184_v22 = vld [vmem:[%s1966_s0 + $0x130] sm:$0xff]  ;;  %v185_v24 = vld [vmem:[%s1966_s0 + $0x138] sm:$0xff]  ;;  %v186_v26 = vld [vmem:[%s1966_s0 + $0x140] sm:$0xff] }
   0xa   :  { %1277 = vmatprep.subr.mxu0 %v214_v4  ;;  %1387 = vmatprep.subr.mxu1 %v214_v4  ;;  %v155_v27 = vld [vmem:[%s1966_s0 + $0x48] sm:$0xff]  ;;  %v156_v29 = vld [vmem:[%s1966_s0 + $0x50] sm:$0xff]  ;;  %v157_v31 = vld [vmem:[%s1966_s0 + $0x58] sm:$0xff] }
   0xb   :  { %1278 = vmatpush3.msra.mxu0 %v214_v4  ;;  %1396 = vmatpush3.msra.mxu1 %v214_v4  ;;  %v187_v28 = vld [vmem:[%s1966_s0 + $0x148] sm:$0xff]  ;;  %v188_v30 = vld [vmem:[%s1966_s0 + $0x150] sm:$0xff]  ;;  %v189_v32 = vld [vmem:[%s1966_s0 + $0x158] sm:$0xff] }
   0xc   :  { %1279 = vmatprep.subr.mxu0 %v213_v5  ;;  %1388 = vmatprep.subr.mxu1 %v213_v5  ;;  %v158_v33 = vld [vmem:[%s1966_s0 + $0x60] sm:$0xff]  ;;  %v159_v35 = vld [vmem:[%s1966_s0 + $0x68] sm:$0xff]  ;;  %v160_v37 = vld [vmem:[%s1966_s0 + $0x70] sm:$0xff] }
   0xd   :  { %1280 = vmatpush3.msra.mxu0 %v213_v5  ;;  %1397 = vmatpush3.msra.mxu1 %v213_v5  ;;  %v190_v34 = vld [vmem:[%s1966_s0 + $0x160] sm:$0xff]  ;;  %v191_v36 = vld [vmem:[%s1966_s0 + $0x168] sm:$0xff]  ;;  %v192_v38 = vld [vmem:[%s1966_s0 + $0x170] sm:$0xff] }
   0xe   :  { %1281 = vmatprep.subr.mxu0 %v212_v6  ;;  %1389 = vmatprep.subr.mxu1 %v212_v6  ;;  %v161_v39 = vld [vmem:[%s1966_s0 + $0x78] sm:$0xff]  ;;  %v162_v41 = vld [vmem:[%s1966_s0 + $0x80] sm:$0xff]  ;;  %v163_v43 = vld [vmem:[%s1966_s0 + $0x88] sm:$0xff] }
   0xf   :  { %1282 = vmatpush3.msra.mxu0 %v212_v6  ;;  %1398 = vmatpush3.msra.mxu1 %v212_v6  ;;  %v193_v40 = vld [vmem:[%s1966_s0 + $0x178] sm:$0xff]  ;;  %v194_v42 = vld [vmem:[%s1966_s0 + $0x180] sm:$0xff]  ;;  %v195_v44 = vld [vmem:[%s1966_s0 + $0x188] sm:$0xff] }
  0x10   :  { %1283 = vmatprep.subr.mxu0 %v211_v7  ;;  %1390 = vmatprep.subr.mxu1 %v211_v7  ;;  %v164_v45 = vld [vmem:[%s1966_s0 + $0x90] sm:$0xff]  ;;  %v165_v47 = vld [vmem:[%s1966_s0 + $0x98] sm:$0xff]  ;;  %v166_v49 = vld [vmem:[%s1966_s0 + $0xa0] sm:$0xff] }
  0x11   :  { %1284 = vmatpush3.msra.mxu0 %v211_v7  ;;  %1399 = vmatpush3.msra.mxu1 %v211_v7  ;;  %v196_v46 = vld [vmem:[%s1966_s0 + $0x190] sm:$0xff]  ;;  %v197_v48 = vld [vmem:[%s1966_s0 + $0x198] sm:$0xff]  ;;  %v198_v50 = vld [vmem:[%s1966_s0 + $0x1a0] sm:$0xff] }
  0x12   :  { %1285 = vmatprep.subr.mxu0 %v210_v8  ;;  %1391 = vmatprep.subr.mxu1 %v210_v8  ;;  %v167_v51 = vld [vmem:[%s1966_s0 + $0xa8] sm:$0xff]  ;;  %v168_v53 = vld [vmem:[%s1966_s0 + $0xb0] sm:$0xff]  ;;  %v169_v55 = vld [vmem:[%s1966_s0 + $0xb8] sm:$0xff] }
  0x13   :  { %1286 = vmatpush3.msra.mxu0 %v210_v8  ;;  %1400 = vmatpush3.msra.mxu1 %v210_v8  ;;  %v199_v52 = vld [vmem:[%s1966_s0 + $0x1a8] sm:$0xff]  ;;  %v200_v54 = vld [vmem:[%s1966_s0 + $0x1b0] sm:$0xff]  ;;  %v201_v56 = vld [vmem:[%s1966_s0 + $0x1b8] sm:$0xff] }
  0x14   :  { %1287 = vmatprep.mubr.msk.f32.mxu0 %vm219_vm0, %v146_v9  ;;  %1335 = vmatprep.mubr.msk.f32.mxu1 %vm219_vm0, %v178_v10  ;;  %v170_v57 = vld [vmem:[%s1966_s0 + $0xc0] sm:$0xff]  ;;  %v171_v59 = vld [vmem:[%s1966_s0 + $0xc8] sm:$0xff]  ;;  %v172_v61 = vld [vmem:[%s1966_s0 + $0xd0] sm:$0xff] }
  0x15   :  { %1288 = vmatmul.mubr.msk.f32.vlgmr.msra.gmra.mxu0 %vm219_vm0, %v147_v11  ;;  %1336 = vmatmul.mubr.msk.f32.vlgmr.msra.gmra.mxu1 %vm219_vm0, %v179_v12  ;;  %v202_v58 = vld [vmem:[%s1966_s0 + $0x1c0] sm:$0xff]  ;;  %v203_v60 = vld [vmem:[%s1966_s0 + $0x1c8] sm:$0xff]  ;;  %v204_v62 = vld [vmem:[%s1966_s0 + $0x1d0] sm:$0xff] }
  0x16   :  { %1290 = vmatprep.mubr.msk.f32.mxu0 %vm219_vm0, %v148_v13  ;;  %1338 = vmatprep.mubr.msk.f32.mxu1 %vm219_vm0, %v180_v14  ;;  %v173_v63 = vld [vmem:[%s1966_s0 + $0xd8] sm:$0xff]  ;;  %v174_v1 = vld [vmem:[%s1966_s0 + $0xe0] sm:$0xff]  ;;  %v175_v3 = vld [vmem:[%s1966_s0 + $0xe8] sm:$0xff] }
  0x17   :  { %v205_v0 = vld [vmem:[%s1966_s0 + $0x1d8] sm:$0xff]  ;;  %v206_v2 = vld [vmem:[%s1966_s0 + $0x1e0] sm:$0xff]  ;;  %v207_v4 = vld [vmem:[%s1966_s0 + $0x1e8] sm:$0xff] }
  0x18   :  { %v176_v5 = vld [vmem:[%s1966_s0 + $0xf0] sm:$0xff]  ;;  %v177_v7 = vld [vmem:[%s1966_s0 + $0xf8] sm:$0xff]  ;;  %v1707_v9 = vld [vmem:[%s1967_s2] ss:$0 sm:$0xff] }
  0x19   :  { %1291 = vmatmul.mubr.msk.f32.gmra.mxu0 %vm219_vm0, %v149_v15  ;;  %1339 = vmatmul.mubr.msk.f32.gmra.mxu1 %vm219_vm0, %v181_v16  ;;  %v208_v6 = vld [vmem:[%s1966_s0 + $0x1f0] sm:$0xff]  ;;  %v209_v8 = vld [vmem:[%s1966_s0 + $0x1f8] sm:$0xff] }
  0x1a   :  { %1293 = vmatprep.mubr.msk.f32.mxu0 %vm219_vm0, %v150_v17  ;;  %1341 = vmatprep.mubr.msk.f32.mxu1 %vm219_vm0, %v182_v18 }
  0x1d   :  { %1294 = vmatmul.mubr.msk.f32.gmra.mxu0 %vm219_vm0, %v151_v19  ;;  %1342 = vmatmul.mubr.msk.f32.gmra.mxu1 %vm219_vm0, %v183_v20 }
  0x1e   :  { %1296 = vmatprep.mubr.msk.f32.mxu0 %vm219_vm0, %v152_v21  ;;  %1344 = vmatprep.mubr.msk.f32.mxu1 %vm219_vm0, %v184_v22 }
  0x21   :  { %1297 = vmatmul.mubr.msk.f32.gmra.mxu0 %vm219_vm0, %v153_v23  ;;  %1345 = vmatmul.mubr.msk.f32.gmra.mxu1 %vm219_vm0, %v185_v24 }
  0x22   :  { %1299 = vmatprep.mubr.msk.f32.mxu0 %vm219_vm0, %v154_v25  ;;  %1347 = vmatprep.mubr.msk.f32.mxu1 %vm219_vm0, %v186_v26 }
  0x25   :  { %1300 = vmatmul.mubr.msk.f32.gmra.mxu0 %vm219_vm0, %v155_v27  ;;  %1348 = vmatmul.mubr.msk.f32.gmra.mxu1 %vm219_vm0, %v187_v28 }
  0x26   :  { %1302 = vmatprep.mubr.msk.f32.mxu0 %vm219_vm0, %v156_v29  ;;  %1350 = vmatprep.mubr.msk.f32.mxu1 %vm219_vm0, %v188_v30 }
  0x29   :  { %1303 = vmatmul.mubr.msk.f32.gmra.mxu0 %vm219_vm0, %v157_v31  ;;  %1351 = vmatmul.mubr.msk.f32.gmra.mxu1 %vm219_vm0, %v189_v32 }
  0x2a   :  { %1305 = vmatprep.mubr.msk.f32.mxu0 %vm219_vm0, %v158_v33  ;;  %1353 = vmatprep.mubr.msk.f32.mxu1 %vm219_vm0, %v190_v34 }
  0x2d   :  { %1306 = vmatmul.mubr.msk.f32.gmra.mxu0 %vm219_vm0, %v159_v35  ;;  %1354 = vmatmul.mubr.msk.f32.gmra.mxu1 %vm219_vm0, %v191_v36 }
  0x2e   :  { %1308 = vmatprep.mubr.msk.f32.mxu0 %vm219_vm0, %v160_v37  ;;  %1356 = vmatprep.mubr.msk.f32.mxu1 %vm219_vm0, %v192_v38 }
  0x31   :  { %1309 = vmatmul.mubr.msk.f32.gmra.mxu0 %vm219_vm0, %v161_v39  ;;  %1357 = vmatmul.mubr.msk.f32.gmra.mxu1 %vm219_vm0, %v193_v40 }
  0x32   :  { %1311 = vmatprep.mubr.msk.f32.mxu0 %vm219_vm0, %v162_v41  ;;  %1359 = vmatprep.mubr.msk.f32.mxu1 %vm219_vm0, %v194_v42 }
  0x35   :  { %1312 = vmatmul.mubr.msk.f32.gmra.mxu0 %vm219_vm0, %v163_v43  ;;  %1360 = vmatmul.mubr.msk.f32.gmra.mxu1 %vm219_vm0, %v195_v44 }
  0x36   :  { %1314 = vmatprep.mubr.msk.f32.mxu0 %vm219_vm0, %v164_v45  ;;  %1362 = vmatprep.mubr.msk.f32.mxu1 %vm219_vm0, %v196_v46 }
  0x39   :  { %1315 = vmatmul.mubr.msk.f32.gmra.mxu0 %vm219_vm0, %v165_v47  ;;  %1363 = vmatmul.mubr.msk.f32.gmra.mxu1 %vm219_vm0, %v197_v48 }
  0x3a   :  { %1317 = vmatprep.mubr.msk.f32.mxu0 %vm219_vm0, %v166_v49  ;;  %1365 = vmatprep.mubr.msk.f32.mxu1 %vm219_vm0, %v198_v50 }
  0x3d   :  { %1318 = vmatmul.mubr.msk.f32.gmra.mxu0 %vm219_vm0, %v167_v51  ;;  %1366 = vmatmul.mubr.msk.f32.gmra.mxu1 %vm219_vm0, %v199_v52 }
  0x3e   :  { %1320 = vmatprep.mubr.msk.f32.mxu0 %vm219_vm0, %v168_v53  ;;  %1368 = vmatprep.mubr.msk.f32.mxu1 %vm219_vm0, %v200_v54 }
  0x41   :  { %1321 = vmatmul.mubr.msk.f32.gmra.mxu0 %vm219_vm0, %v169_v55  ;;  %1369 = vmatmul.mubr.msk.f32.gmra.mxu1 %vm219_vm0, %v201_v56 }
  0x42   :  { %1323 = vmatprep.mubr.msk.f32.mxu0 %vm219_vm0, %v170_v57  ;;  %1371 = vmatprep.mubr.msk.f32.mxu1 %vm219_vm0, %v202_v58 }
  0x45   :  { %1324 = vmatmul.mubr.msk.f32.gmra.mxu0 %vm219_vm0, %v171_v59  ;;  %1372 = vmatmul.mubr.msk.f32.gmra.mxu1 %vm219_vm0, %v203_v60 }
  0x46   :  { %1326 = vmatprep.mubr.msk.f32.mxu0 %vm219_vm0, %v172_v61  ;;  %1374 = vmatprep.mubr.msk.f32.mxu1 %vm219_vm0, %v204_v62 }
  0x49   :  { %1327 = vmatmul.mubr.msk.f32.gmra.mxu0 %vm219_vm0, %v173_v63  ;;  %1375 = vmatmul.mubr.msk.f32.gmra.mxu1 %vm219_vm0, %v205_v0 }
  0x4a   :  { %1329 = vmatprep.mubr.msk.f32.mxu0 %vm219_vm0, %v174_v1  ;;  %1377 = vmatprep.mubr.msk.f32.mxu1 %vm219_vm0, %v206_v2 }
  0x4d   :  { %1330 = vmatmul.mubr.msk.f32.gmra.mxu0 %vm219_vm0, %v175_v3  ;;  %1378 = vmatmul.mubr.msk.f32.gmra.mxu1 %vm219_vm0, %v207_v4 }
  0x4e   :  { %1332 = vmatprep.mubr.msk.f32.mxu0 %vm219_vm0, %v176_v5  ;;  %1380 = vmatprep.mubr.msk.f32.mxu1 %vm219_vm0, %v208_v6 }
  0x51   :  { %1333 = vmatmul.mubr.msk.f32.gmra.mxu0 %vm219_vm0, %v177_v7  ;;  %1381 = vmatmul.mubr.msk.f32.gmra.mxu1 %vm219_vm0, %v209_v8 }
  0xd5   :  { %v1289_v10 = vpop.f32.mrf.mxu0  ;;  %v1337_v11 = vpop.f32.mrf.mxu1 }
  0xd6   :  { %v1000_v12 = vadd.f32 %v1289_v10, %v1707_v9  ;;  %v1032_v13 = vadd.f32 %v1337_v11, %v1707_v9 }
  0xd7   :  { %v478_v14 = vpop.f32.mrf.mxu0  ;;  %v638_v15 = vpop.f32.mrf.mxu1 }
  0xd8   :  { %1064 = vst [vmem:[%s1968_s3 + $0x8] sm:$0xff] %v1000_v12  ;;  %1096 = vst [vmem:[%s1968_s3 + $0x108] sm:$0xff] %v1032_v13  ;;  %v999_v16 = vadd.f32 %v1707_v9, %v478_v14  ;;  %v1031_v17 = vadd.f32 %v1707_v9, %v638_v15 }
  0xd9   :  { %v1292_v18 = vpop.f32.mrf.mxu0  ;;  %v1340_v19 = vpop.f32.mrf.mxu1 }
  0xda   :  { %1063 = vst [vmem:[%s1968_s3] sm:$0xff] %v999_v16  ;;  %1095 = vst [vmem:[%s1968_s3 + $0x100] sm:$0xff] %v1031_v17  ;;  %v1002_v20 = vadd.f32 %v1292_v18, %v1707_v9  ;;  %v1034_v21 = vadd.f32 %v1340_v19, %v1707_v9 }
  0xdb   :  { %v488_v22 = vpop.f32.mrf.mxu0  ;;  %v648_v23 = vpop.f32.mrf.mxu1 }
  0xdc   :  { %1066 = vst [vmem:[%s1968_s3 + $0x18] sm:$0xff] %v1002_v20  ;;  %1098 = vst [vmem:[%s1968_s3 + $0x118] sm:$0xff] %v1034_v21  ;;  %v1001_v24 = vadd.f32 %v1707_v9, %v488_v22  ;;  %v1033_v25 = vadd.f32 %v1707_v9, %v648_v23 }
  0xdd   :  { %v1295_v26 = vpop.f32.mrf.mxu0  ;;  %v1343_v27 = vpop.f32.mrf.mxu1 }
  0xde   :  { %1065 = vst [vmem:[%s1968_s3 + $0x10] sm:$0xff] %v1001_v24  ;;  %1097 = vst [vmem:[%s1968_s3 + $0x110] sm:$0xff] %v1033_v25  ;;  %v1004_v28 = vadd.f32 %v1295_v26, %v1707_v9  ;;  %v1036_v29 = vadd.f32 %v1343_v27, %v1707_v9 }
  0xdf   :  { %v498_v30 = vpop.f32.mrf.mxu0  ;;  %v658_v31 = vpop.f32.mrf.mxu1 }
  0xe0   :  { %1068 = vst [vmem:[%s1968_s3 + $0x28] sm:$0xff] %v1004_v28  ;;  %1100 = vst [vmem:[%s1968_s3 + $0x128] sm:$0xff] %v1036_v29  ;;  %v1003_v32 = vadd.f32 %v1707_v9, %v498_v30  ;;  %v1035_v33 = vadd.f32 %v1707_v9, %v658_v31 }
  0xe1   :  { %v1298_v34 = vpop.f32.mrf.mxu0  ;;  %v1346_v35 = vpop.f32.mrf.mxu1 }
  0xe2   :  { %1067 = vst [vmem:[%s1968_s3 + $0x20] sm:$0xff] %v1003_v32  ;;  %1099 = vst [vmem:[%s1968_s3 + $0x120] sm:$0xff] %v1035_v33  ;;  %v1006_v36 = vadd.f32 %v1298_v34, %v1707_v9  ;;  %v1038_v37 = vadd.f32 %v1346_v35, %v1707_v9 }
  0xe3   :  { %v508_v38 = vpop.f32.mrf.mxu0  ;;  %v668_v39 = vpop.f32.mrf.mxu1 }
  0xe4   :  { %1070 = vst [vmem:[%s1968_s3 + $0x38] sm:$0xff] %v1006_v36  ;;  %1102 = vst [vmem:[%s1968_s3 + $0x138] sm:$0xff] %v1038_v37  ;;  %v1005_v40 = vadd.f32 %v1707_v9, %v508_v38  ;;  %v1037_v41 = vadd.f32 %v1707_v9, %v668_v39 }
  0xe5   :  { %v1301_v42 = vpop.f32.mrf.mxu0  ;;  %v1349_v43 = vpop.f32.mrf.mxu1 }
  0xe6   :  { %1069 = vst [vmem:[%s1968_s3 + $0x30] sm:$0xff] %v1005_v40  ;;  %1101 = vst [vmem:[%s1968_s3 + $0x130] sm:$0xff] %v1037_v41  ;;  %v1008_v44 = vadd.f32 %v1301_v42, %v1707_v9  ;;  %v1040_v45 = vadd.f32 %v1349_v43, %v1707_v9 }
  0xe7   :  { %v518_v46 = vpop.f32.mrf.mxu0  ;;  %v678_v47 = vpop.f32.mrf.mxu1 }
  0xe8   :  { %1072 = vst [vmem:[%s1968_s3 + $0x48] sm:$0xff] %v1008_v44  ;;  %1104 = vst [vmem:[%s1968_s3 + $0x148] sm:$0xff] %v1040_v45  ;;  %v1007_v48 = vadd.f32 %v1707_v9, %v518_v46  ;;  %v1039_v49 = vadd.f32 %v1707_v9, %v678_v47 }
  0xe9   :  { %v1304_v50 = vpop.f32.mrf.mxu0  ;;  %v1352_v51 = vpop.f32.mrf.mxu1 }
  0xea   :  { %1071 = vst [vmem:[%s1968_s3 + $0x40] sm:$0xff] %v1007_v48  ;;  %1103 = vst [vmem:[%s1968_s3 + $0x140] sm:$0xff] %v1039_v49  ;;  %v1010_v52 = vadd.f32 %v1304_v50, %v1707_v9  ;;  %v1042_v53 = vadd.f32 %v1352_v51, %v1707_v9 }
  0xeb   :  { %v528_v54 = vpop.f32.mrf.mxu0  ;;  %v688_v55 = vpop.f32.mrf.mxu1 }
  0xec   :  { %1074 = vst [vmem:[%s1968_s3 + $0x58] sm:$0xff] %v1010_v52  ;;  %1106 = vst [vmem:[%s1968_s3 + $0x158] sm:$0xff] %v1042_v53  ;;  %v1009_v56 = vadd.f32 %v1707_v9, %v528_v54  ;;  %v1041_v57 = vadd.f32 %v1707_v9, %v688_v55 }
  0xed   :  { %v1307_v58 = vpop.f32.mrf.mxu0  ;;  %v1355_v59 = vpop.f32.mrf.mxu1 }
  0xee   :  { %1073 = vst [vmem:[%s1968_s3 + $0x50] sm:$0xff] %v1009_v56  ;;  %1105 = vst [vmem:[%s1968_s3 + $0x150] sm:$0xff] %v1041_v57  ;;  %v1012_v60 = vadd.f32 %v1307_v58, %v1707_v9  ;;  %v1044_v61 = vadd.f32 %v1355_v59, %v1707_v9 }
  0xef   :  { %v538_v62 = vpop.f32.mrf.mxu0  ;;  %v698_v63 = vpop.f32.mrf.mxu1 }
  0xf0   :  { %1076 = vst [vmem:[%s1968_s3 + $0x68] sm:$0xff] %v1012_v60  ;;  %1108 = vst [vmem:[%s1968_s3 + $0x168] sm:$0xff] %v1044_v61  ;;  %v1011_v0 = vadd.f32 %v1707_v9, %v538_v62  ;;  %v1043_v1 = vadd.f32 %v1707_v9, %v698_v63 }
  0xf1   :  { %v1310_v2 = vpop.f32.mrf.mxu0  ;;  %v1358_v3 = vpop.f32.mrf.mxu1 }
  0xf2   :  { %1075 = vst [vmem:[%s1968_s3 + $0x60] sm:$0xff] %v1011_v0  ;;  %1107 = vst [vmem:[%s1968_s3 + $0x160] sm:$0xff] %v1043_v1  ;;  %v1014_v4 = vadd.f32 %v1310_v2, %v1707_v9  ;;  %v1046_v5 = vadd.f32 %v1358_v3, %v1707_v9 }
  0xf3   :  { %v548_v6 = vpop.f32.mrf.mxu0  ;;  %v708_v7 = vpop.f32.mrf.mxu1 }
  0xf4   :  { %1078 = vst [vmem:[%s1968_s3 + $0x78] sm:$0xff] %v1014_v4  ;;  %1110 = vst [vmem:[%s1968_s3 + $0x178] sm:$0xff] %v1046_v5  ;;  %v1013_v8 = vadd.f32 %v1707_v9, %v548_v6  ;;  %v1045_v10 = vadd.f32 %v1707_v9, %v708_v7 }
  0xf5   :  { %v1313_v11 = vpop.f32.mrf.mxu0  ;;  %v1361_v12 = vpop.f32.mrf.mxu1 }
  0xf6   :  { %1077 = vst [vmem:[%s1968_s3 + $0x70] sm:$0xff] %v1013_v8  ;;  %1109 = vst [vmem:[%s1968_s3 + $0x170] sm:$0xff] %v1045_v10  ;;  %v1016_v13 = vadd.f32 %v1313_v11, %v1707_v9  ;;  %v1048_v14 = vadd.f32 %v1361_v12, %v1707_v9 }
  0xf7   :  { %v558_v15 = vpop.f32.mrf.mxu0  ;;  %v718_v16 = vpop.f32.mrf.mxu1 }
  0xf8   :  { %1080 = vst [vmem:[%s1968_s3 + $0x88] sm:$0xff] %v1016_v13  ;;  %1112 = vst [vmem:[%s1968_s3 + $0x188] sm:$0xff] %v1048_v14  ;;  %v1015_v17 = vadd.f32 %v1707_v9, %v558_v15  ;;  %v1047_v18 = vadd.f32 %v1707_v9, %v718_v16 }
  0xf9   :  { %v1316_v19 = vpop.f32.mrf.mxu0  ;;  %v1364_v20 = vpop.f32.mrf.mxu1 }
  0xfa   :  { %1079 = vst [vmem:[%s1968_s3 + $0x80] sm:$0xff] %v1015_v17  ;;  %1111 = vst [vmem:[%s1968_s3 + $0x180] sm:$0xff] %v1047_v18  ;;  %v1018_v21 = vadd.f32 %v1316_v19, %v1707_v9  ;;  %v1050_v22 = vadd.f32 %v1364_v20, %v1707_v9 }
  0xfb   :  { %v568_v23 = vpop.f32.mrf.mxu0  ;;  %v728_v24 = vpop.f32.mrf.mxu1 }
  0xfc   :  { %1082 = vst [vmem:[%s1968_s3 + $0x98] sm:$0xff] %v1018_v21  ;;  %1114 = vst [vmem:[%s1968_s3 + $0x198] sm:$0xff] %v1050_v22  ;;  %v1017_v25 = vadd.f32 %v1707_v9, %v568_v23  ;;  %v1049_v26 = vadd.f32 %v1707_v9, %v728_v24 }
  0xfd   :  { %v1319_v27 = vpop.f32.mrf.mxu0  ;;  %v1367_v28 = vpop.f32.mrf.mxu1 }
  0xfe   :  { %1081 = vst [vmem:[%s1968_s3 + $0x90] sm:$0xff] %v1017_v25  ;;  %1113 = vst [vmem:[%s1968_s3 + $0x190] sm:$0xff] %v1049_v26  ;;  %v1020_v29 = vadd.f32 %v1319_v27, %v1707_v9  ;;  %v1052_v30 = vadd.f32 %v1367_v28, %v1707_v9 }
  0xff   :  { %v578_v31 = vpop.f32.mrf.mxu0  ;;  %v738_v32 = vpop.f32.mrf.mxu1 }
 0x100   :  { %1084 = vst [vmem:[%s1968_s3 + $0xa8] sm:$0xff] %v1020_v29  ;;  %1116 = vst [vmem:[%s1968_s3 + $0x1a8] sm:$0xff] %v1052_v30  ;;  %v1019_v33 = vadd.f32 %v1707_v9, %v578_v31  ;;  %v1051_v34 = vadd.f32 %v1707_v9, %v738_v32 }
 0x101   :  { %v1322_v35 = vpop.f32.mrf.mxu0  ;;  %v1370_v36 = vpop.f32.mrf.mxu1 }
 0x102   :  { %1083 = vst [vmem:[%s1968_s3 + $0xa0] sm:$0xff] %v1019_v33  ;;  %1115 = vst [vmem:[%s1968_s3 + $0x1a0] sm:$0xff] %v1051_v34  ;;  %v1022_v37 = vadd.f32 %v1322_v35, %v1707_v9  ;;  %v1054_v38 = vadd.f32 %v1370_v36, %v1707_v9 }
 0x103   :  { %v588_v39 = vpop.f32.mrf.mxu0  ;;  %v748_v40 = vpop.f32.mrf.mxu1 }
 0x104   :  { %1086 = vst [vmem:[%s1968_s3 + $0xb8] sm:$0xff] %v1022_v37  ;;  %1118 = vst [vmem:[%s1968_s3 + $0x1b8] sm:$0xff] %v1054_v38  ;;  %v1021_v41 = vadd.f32 %v1707_v9, %v588_v39  ;;  %v1053_v42 = vadd.f32 %v1707_v9, %v748_v40 }
 0x105   :  { %v1325_v43 = vpop.f32.mrf.mxu0  ;;  %v1373_v44 = vpop.f32.mrf.mxu1 }
 0x106   :  { %1085 = vst [vmem:[%s1968_s3 + $0xb0] sm:$0xff] %v1021_v41  ;;  %1117 = vst [vmem:[%s1968_s3 + $0x1b0] sm:$0xff] %v1053_v42  ;;  %v1024_v45 = vadd.f32 %v1325_v43, %v1707_v9  ;;  %v1056_v46 = vadd.f32 %v1373_v44, %v1707_v9 }
 0x107   :  { %v598_v47 = vpop.f32.mrf.mxu0  ;;  %v758_v48 = vpop.f32.mrf.mxu1 }
 0x108   :  { %1088 = vst [vmem:[%s1968_s3 + $0xc8] sm:$0xff] %v1024_v45  ;;  %1120 = vst [vmem:[%s1968_s3 + $0x1c8] sm:$0xff] %v1056_v46  ;;  %v1023_v49 = vadd.f32 %v1707_v9, %v598_v47  ;;  %v1055_v50 = vadd.f32 %v1707_v9, %v758_v48 }
 0x109   :  { %v1328_v51 = vpop.f32.mrf.mxu0  ;;  %v1376_v52 = vpop.f32.mrf.mxu1 }
 0x10a   :  { %1087 = vst [vmem:[%s1968_s3 + $0xc0] sm:$0xff] %v1023_v49  ;;  %1119 = vst [vmem:[%s1968_s3 + $0x1c0] sm:$0xff] %v1055_v50  ;;  %v1026_v53 = vadd.f32 %v1328_v51, %v1707_v9  ;;  %v1058_v54 = vadd.f32 %v1376_v52, %v1707_v9 }
 0x10b   :  { %v608_v55 = vpop.f32.mrf.mxu0  ;;  %v768_v56 = vpop.f32.mrf.mxu1 }
 0x10c   :  { %1090 = vst [vmem:[%s1968_s3 + $0xd8] sm:$0xff] %v1026_v53  ;;  %1122 = vst [vmem:[%s1968_s3 + $0x1d8] sm:$0xff] %v1058_v54  ;;  %v1025_v57 = vadd.f32 %v1707_v9, %v608_v55  ;;  %v1057_v58 = vadd.f32 %v1707_v9, %v768_v56 }
 0x10d   :  { %v1331_v59 = vpop.f32.mrf.mxu0  ;;  %v1379_v60 = vpop.f32.mrf.mxu1 }
 0x10e   :  { %1089 = vst [vmem:[%s1968_s3 + $0xd0] sm:$0xff] %v1025_v57  ;;  %1121 = vst [vmem:[%s1968_s3 + $0x1d0] sm:$0xff] %v1057_v58  ;;  %v1028_v61 = vadd.f32 %v1331_v59, %v1707_v9  ;;  %v1060_v62 = vadd.f32 %v1379_v60, %v1707_v9 }
 0x10f   :  { %v618_v63 = vpop.f32.mrf.mxu0  ;;  %v778_v0 = vpop.f32.mrf.mxu1 }
 0x110   :  { %1092 = vst [vmem:[%s1968_s3 + $0xe8] sm:$0xff] %v1028_v61  ;;  %1124 = vst [vmem:[%s1968_s3 + $0x1e8] sm:$0xff] %v1060_v62  ;;  %v1027_v1 = vadd.f32 %v1707_v9, %v618_v63  ;;  %v1059_v2 = vadd.f32 %v1707_v9, %v778_v0 }
 0x111   :  { %v1334_v3 = vpop.f32.mrf.mxu0  ;;  %v1382_v4 = vpop.f32.mrf.mxu1 }
 0x112   :  { %1091 = vst [vmem:[%s1968_s3 + $0xe0] sm:$0xff] %v1027_v1  ;;  %1123 = vst [vmem:[%s1968_s3 + $0x1e0] sm:$0xff] %v1059_v2  ;;  %v1030_v5 = vadd.f32 %v1334_v3, %v1707_v9  ;;  %v1062_v6 = vadd.f32 %v1382_v4, %v1707_v9 }
 0x113   :  { %v628_v7 = vpop.f32.mrf.mxu0  ;;  %v788_v8 = vpop.f32.mrf.mxu1 }
 0x114   :  { %1094 = vst [vmem:[%s1968_s3 + $0xf8] sm:$0xff] %v1030_v5  ;;  %1126 = vst [vmem:[%s1968_s3 + $0x1f8] sm:$0xff] %v1062_v6  ;;  %v1029_v10 = vadd.f32 %v1707_v9, %v628_v7  ;;  %v1061_v11 = vadd.f32 %v1707_v9, %v788_v8 }
 0x116   :  { %1093 = vst [vmem:[%s1968_s3 + $0xf0] sm:$0xff] %v1029_v10  ;;  %1125 = vst [vmem:[%s1968_s3 + $0x1f0] sm:$0xff] %v1061_v11 }

// kernel: upsample_block_forward.8
= control target key start
LH: loop header
LB: loop body
LE: loop exit
PB: predicated region body
PF: predicated region fallthrough
CT: control target
= control target key end

     0   :  { %vm408_vm0 = vcmask 1043456   ;;  %vm215_vm1 = vcmask 293888   ;;  %s1934_s1 = inlined_call_operand.vmem [shape: f32[36,128], index: 1, kind: input, shape index: {}]   ;;  %s1935_s0 = inlined_call_operand.vmem [shape: f32[512,36], index: 0, kind: input, shape index: {}]   ;;  %s1936_s2 = inlined_call_operand.vmem [shape: f32[1,128], index: 2, kind: input, shape index: {}]   ;;  %s1937_s3 = inlined_call_operand.vmem [shape: f32[512,128], index: 3, kind: output, shape index: {}]  }
   0x1   :  { %v214_v0 = vld [vmem:[%s1934_s1 + $0x20] sm:$0xf]  ;;  %v213_v1 = vld [vmem:[%s1934_s1 + $0x18] sm:$0xff]  ;;  %v212_v2 = vld [vmem:[%s1934_s1 + $0x10] sm:$0xff] }
   0x2   :  { %1266 = vmatprep.subr.msk.mxu0 %vm408_vm0, %v214_v0  ;;  %1372 = vmatprep.subr.msk.mxu1 %vm408_vm0, %v214_v0  ;;  %v211_v3 = vld [vmem:[%s1934_s1 + $0x8] sm:$0xff]  ;;  %v210_v4 = vld [vmem:[%s1934_s1] sm:$0xff]  ;;  %v148_v9 = vld [vmem:[%s1935_s0 + $0x10] sm:$0xff] }
   0x3   :  { %1267 = vmatpush3.msk.msra.mxu0 %vm408_vm0, %v214_v0  ;;  %1377 = vmatpush3.msk.msra.mxu1 %vm408_vm0, %v214_v0  ;;  %v146_v5 = vld [vmem:[%s1935_s0] sm:$0xff]  ;;  %v147_v7 = vld [vmem:[%s1935_s0 + $0x8] sm:$0xff]  ;;  %v180_v10 = vld [vmem:[%s1935_s0 + $0x110] sm:$0xff] }
   0x4   :  { %1268 = vmatprep.subr.mxu0 %v213_v1  ;;  %1373 = vmatprep.subr.mxu1 %v213_v1  ;;  %v178_v6 = vld [vmem:[%s1935_s0 + $0x100] sm:$0xff]  ;;  %v179_v8 = vld [vmem:[%s1935_s0 + $0x108] sm:$0xff]  ;;  %v149_v11 = vld [vmem:[%s1935_s0 + $0x18] sm:$0xff] }
   0x5   :  { %1269 = vmatpush3.msra.mxu0 %v213_v1  ;;  %1378 = vmatpush3.msra.mxu1 %v213_v1  ;;  %v181_v12 = vld [vmem:[%s1935_s0 + $0x118] sm:$0xff]  ;;  %v150_v13 = vld [vmem:[%s1935_s0 + $0x20] sm:$0xff]  ;;  %v151_v15 = vld [vmem:[%s1935_s0 + $0x28] sm:$0xff] }
   0x6   :  { %1270 = vmatprep.subr.mxu0 %v212_v2  ;;  %1374 = vmatprep.subr.mxu1 %v212_v2  ;;  %v182_v14 = vld [vmem:[%s1935_s0 + $0x120] sm:$0xff]  ;;  %v183_v16 = vld [vmem:[%s1935_s0 + $0x128] sm:$0xff]  ;;  %v152_v17 = vld [vmem:[%s1935_s0 + $0x30] sm:$0xff] }
   0x7   :  { %1271 = vmatpush3.msra.mxu0 %v212_v2  ;;  %1379 = vmatpush3.msra.mxu1 %v212_v2  ;;  %v184_v18 = vld [vmem:[%s1935_s0 + $0x130] sm:$0xff]  ;;  %v153_v19 = vld [vmem:[%s1935_s0 + $0x38] sm:$0xff]  ;;  %v154_v21 = vld [vmem:[%s1935_s0 + $0x40] sm:$0xff] }
   0x8   :  { %1272 = vmatprep.subr.mxu0 %v211_v3  ;;  %1375 = vmatprep.subr.mxu1 %v211_v3  ;;  %v185_v20 = vld [vmem:[%s1935_s0 + $0x138] sm:$0xff]  ;;  %v186_v22 = vld [vmem:[%s1935_s0 + $0x140] sm:$0xff]  ;;  %v155_v23 = vld [vmem:[%s1935_s0 + $0x48] sm:$0xff] }
   0x9   :  { %1273 = vmatpush3.msra.mxu0 %v211_v3  ;;  %1380 = vmatpush3.msra.mxu1 %v211_v3  ;;  %v187_v24 = vld [vmem:[%s1935_s0 + $0x148] sm:$0xff]  ;;  %v156_v25 = vld [vmem:[%s1935_s0 + $0x50] sm:$0xff]  ;;  %v157_v27 = vld [vmem:[%s1935_s0 + $0x58] sm:$0xff] }
   0xa   :  { %1274 = vmatprep.subr.mxu0 %v210_v4  ;;  %1376 = vmatprep.subr.mxu1 %v210_v4  ;;  %v188_v26 = vld [vmem:[%s1935_s0 + $0x150] sm:$0xff]  ;;  %v189_v28 = vld [vmem:[%s1935_s0 + $0x158] sm:$0xff]  ;;  %v158_v29 = vld [vmem:[%s1935_s0 + $0x60] sm:$0xff] }
   0xb   :  { %1275 = vmatpush3.msra.mxu0 %v210_v4  ;;  %1381 = vmatpush3.msra.mxu1 %v210_v4  ;;  %v190_v30 = vld [vmem:[%s1935_s0 + $0x160] sm:$0xff]  ;;  %v159_v31 = vld [vmem:[%s1935_s0 + $0x68] sm:$0xff]  ;;  %v160_v33 = vld [vmem:[%s1935_s0 + $0x70] sm:$0xff] }
   0xc   :  { %1276 = vmatprep.mubr.msk.f32.mxu0 %vm215_vm1, %v146_v5  ;;  %1324 = vmatprep.mubr.msk.f32.mxu1 %vm215_vm1, %v178_v6  ;;  %v191_v32 = vld [vmem:[%s1935_s0 + $0x168] sm:$0xff]  ;;  %v192_v34 = vld [vmem:[%s1935_s0 + $0x170] sm:$0xff]  ;;  %v161_v35 = vld [vmem:[%s1935_s0 + $0x78] sm:$0xff] }
   0xd   :  { %1277 = vmatmul.mubr.msk.f32.vlgmr.msra.gmra.mxu0 %vm215_vm1, %v147_v7  ;;  %1325 = vmatmul.mubr.msk.f32.vlgmr.msra.gmra.mxu1 %vm215_vm1, %v179_v8  ;;  %v193_v36 = vld [vmem:[%s1935_s0 + $0x178] sm:$0xff]  ;;  %v162_v37 = vld [vmem:[%s1935_s0 + $0x80] sm:$0xff]  ;;  %v163_v39 = vld [vmem:[%s1935_s0 + $0x88] sm:$0xff] }
   0xe   :  { %1279 = vmatprep.mubr.msk.f32.mxu0 %vm215_vm1, %v148_v9  ;;  %1327 = vmatprep.mubr.msk.f32.mxu1 %vm215_vm1, %v180_v10  ;;  %v194_v38 = vld [vmem:[%s1935_s0 + $0x180] sm:$0xff]  ;;  %v195_v40 = vld [vmem:[%s1935_s0 + $0x188] sm:$0xff]  ;;  %v164_v41 = vld [vmem:[%s1935_s0 + $0x90] sm:$0xff] }
   0xf   :  { %v196_v42 = vld [vmem:[%s1935_s0 + $0x190] sm:$0xff]  ;;  %v165_v43 = vld [vmem:[%s1935_s0 + $0x98] sm:$0xff]  ;;  %v166_v45 = vld [vmem:[%s1935_s0 + $0xa0] sm:$0xff] }
  0x10   :  { %v197_v44 = vld [vmem:[%s1935_s0 + $0x198] sm:$0xff]  ;;  %v198_v46 = vld [vmem:[%s1935_s0 + $0x1a0] sm:$0xff]  ;;  %v167_v47 = vld [vmem:[%s1935_s0 + $0xa8] sm:$0xff] }
  0x11   :  { %1280 = vmatmul.mubr.msk.f32.gmra.mxu0 %vm215_vm1, %v149_v11  ;;  %1328 = vmatmul.mubr.msk.f32.gmra.mxu1 %vm215_vm1, %v181_v12  ;;  %v199_v48 = vld [vmem:[%s1935_s0 + $0x1a8] sm:$0xff]  ;;  %v168_v49 = vld [vmem:[%s1935_s0 + $0xb0] sm:$0xff]  ;;  %v169_v51 = vld [vmem:[%s1935_s0 + $0xb8] sm:$0xff] }
  0x12   :  { %1282 = vmatprep.mubr.msk.f32.mxu0 %vm215_vm1, %v150_v13  ;;  %1330 = vmatprep.mubr.msk.f32.mxu1 %vm215_vm1, %v182_v14  ;;  %v200_v50 = vld [vmem:[%s1935_s0 + $0x1b0] sm:$0xff]  ;;  %v201_v52 = vld [vmem:[%s1935_s0 + $0x1b8] sm:$0xff]  ;;  %v170_v53 = vld [vmem:[%s1935_s0 + $0xc0] sm:$0xff] }
  0x13   :  { %v202_v54 = vld [vmem:[%s1935_s0 + $0x1c0] sm:$0xff]  ;;  %v171_v55 = vld [vmem:[%s1935_s0 + $0xc8] sm:$0xff]  ;;  %v172_v57 = vld [vmem:[%s1935_s0 + $0xd0] sm:$0xff] }
  0x14   :  { %v203_v56 = vld [vmem:[%s1935_s0 + $0x1c8] sm:$0xff]  ;;  %v204_v58 = vld [vmem:[%s1935_s0 + $0x1d0] sm:$0xff]  ;;  %v173_v59 = vld [vmem:[%s1935_s0 + $0xd8] sm:$0xff] }
  0x15   :  { %1283 = vmatmul.mubr.msk.f32.gmra.mxu0 %vm215_vm1, %v151_v15  ;;  %1331 = vmatmul.mubr.msk.f32.gmra.mxu1 %vm215_vm1, %v183_v16  ;;  %v205_v60 = vld [vmem:[%s1935_s0 + $0x1d8] sm:$0xff]  ;;  %v174_v61 = vld [vmem:[%s1935_s0 + $0xe0] sm:$0xff]  ;;  %v175_v63 = vld [vmem:[%s1935_s0 + $0xe8] sm:$0xff] }
  0x16   :  { %1285 = vmatprep.mubr.msk.f32.mxu0 %vm215_vm1, %v152_v17  ;;  %1333 = vmatprep.mubr.msk.f32.mxu1 %vm215_vm1, %v184_v18  ;;  %v206_v62 = vld [vmem:[%s1935_s0 + $0x1e0] sm:$0xff]  ;;  %v207_v0 = vld [vmem:[%s1935_s0 + $0x1e8] sm:$0xff]  ;;  %v176_v1 = vld [vmem:[%s1935_s0 + $0xf0] sm:$0xff] }
  0x17   :  { %v208_v2 = vld [vmem:[%s1935_s0 + $0x1f0] sm:$0xff]  ;;  %v177_v3 = vld [vmem:[%s1935_s0 + $0xf8] sm:$0xff]  ;;  %v1676_v5 = vld [vmem:[%s1936_s2] ss:$0 sm:$0xff] }
  0x18   :  { %v209_v4 = vld [vmem:[%s1935_s0 + $0x1f8] sm:$0xff] }
  0x19   :  { %1286 = vmatmul.mubr.msk.f32.gmra.mxu0 %vm215_vm1, %v153_v19  ;;  %1334 = vmatmul.mubr.msk.f32.gmra.mxu1 %vm215_vm1, %v185_v20 }
  0x1a   :  { %1288 = vmatprep.mubr.msk.f32.mxu0 %vm215_vm1, %v154_v21  ;;  %1336 = vmatprep.mubr.msk.f32.mxu1 %vm215_vm1, %v186_v22 }
  0x1d   :  { %1289 = vmatmul.mubr.msk.f32.gmra.mxu0 %vm215_vm1, %v155_v23  ;;  %1337 = vmatmul.mubr.msk.f32.gmra.mxu1 %vm215_vm1, %v187_v24 }
  0x1e   :  { %1291 = vmatprep.mubr.msk.f32.mxu0 %vm215_vm1, %v156_v25  ;;  %1339 = vmatprep.mubr.msk.f32.mxu1 %vm215_vm1, %v188_v26 }
  0x21   :  { %1292 = vmatmul.mubr.msk.f32.gmra.mxu0 %vm215_vm1, %v157_v27  ;;  %1340 = vmatmul.mubr.msk.f32.gmra.mxu1 %vm215_vm1, %v189_v28 }
  0x22   :  { %1294 = vmatprep.mubr.msk.f32.mxu0 %vm215_vm1, %v158_v29  ;;  %1342 = vmatprep.mubr.msk.f32.mxu1 %vm215_vm1, %v190_v30 }
  0x25   :  { %1295 = vmatmul.mubr.msk.f32.gmra.mxu0 %vm215_vm1, %v159_v31  ;;  %1343 = vmatmul.mubr.msk.f32.gmra.mxu1 %vm215_vm1, %v191_v32 }
  0x26   :  { %1297 = vmatprep.mubr.msk.f32.mxu0 %vm215_vm1, %v160_v33  ;;  %1345 = vmatprep.mubr.msk.f32.mxu1 %vm215_vm1, %v192_v34 }
  0x29   :  { %1298 = vmatmul.mubr.msk.f32.gmra.mxu0 %vm215_vm1, %v161_v35  ;;  %1346 = vmatmul.mubr.msk.f32.gmra.mxu1 %vm215_vm1, %v193_v36 }
  0x2a   :  { %1300 = vmatprep.mubr.msk.f32.mxu0 %vm215_vm1, %v162_v37  ;;  %1348 = vmatprep.mubr.msk.f32.mxu1 %vm215_vm1, %v194_v38 }
  0x2d   :  { %1301 = vmatmul.mubr.msk.f32.gmra.mxu0 %vm215_vm1, %v163_v39  ;;  %1349 = vmatmul.mubr.msk.f32.gmra.mxu1 %vm215_vm1, %v195_v40 }
  0x2e   :  { %1303 = vmatprep.mubr.msk.f32.mxu0 %vm215_vm1, %v164_v41  ;;  %1351 = vmatprep.mubr.msk.f32.mxu1 %vm215_vm1, %v196_v42 }
  0x31   :  { %1304 = vmatmul.mubr.msk.f32.gmra.mxu0 %vm215_vm1, %v165_v43  ;;  %1352 = vmatmul.mubr.msk.f32.gmra.mxu1 %vm215_vm1, %v197_v44 }
  0x32   :  { %1306 = vmatprep.mubr.msk.f32.mxu0 %vm215_vm1, %v166_v45  ;;  %1354 = vmatprep.mubr.msk.f32.mxu1 %vm215_vm1, %v198_v46 }
  0x35   :  { %1307 = vmatmul.mubr.msk.f32.gmra.mxu0 %vm215_vm1, %v167_v47  ;;  %1355 = vmatmul.mubr.msk.f32.gmra.mxu1 %vm215_vm1, %v199_v48 }
  0x36   :  { %1309 = vmatprep.mubr.msk.f32.mxu0 %vm215_vm1, %v168_v49  ;;  %1357 = vmatprep.mubr.msk.f32.mxu1 %vm215_vm1, %v200_v50 }
  0x39   :  { %1310 = vmatmul.mubr.msk.f32.gmra.mxu0 %vm215_vm1, %v169_v51  ;;  %1358 = vmatmul.mubr.msk.f32.gmra.mxu1 %vm215_vm1, %v201_v52 }
  0x3a   :  { %1312 = vmatprep.mubr.msk.f32.mxu0 %vm215_vm1, %v170_v53  ;;  %1360 = vmatprep.mubr.msk.f32.mxu1 %vm215_vm1, %v202_v54 }
  0x3d   :  { %1313 = vmatmul.mubr.msk.f32.gmra.mxu0 %vm215_vm1, %v171_v55  ;;  %1361 = vmatmul.mubr.msk.f32.gmra.mxu1 %vm215_vm1, %v203_v56 }
  0x3e   :  { %1315 = vmatprep.mubr.msk.f32.mxu0 %vm215_vm1, %v172_v57  ;;  %1363 = vmatprep.mubr.msk.f32.mxu1 %vm215_vm1, %v204_v58 }
  0x41   :  { %1316 = vmatmul.mubr.msk.f32.gmra.mxu0 %vm215_vm1, %v173_v59  ;;  %1364 = vmatmul.mubr.msk.f32.gmra.mxu1 %vm215_vm1, %v205_v60 }
  0x42   :  { %1318 = vmatprep.mubr.msk.f32.mxu0 %vm215_vm1, %v174_v61  ;;  %1366 = vmatprep.mubr.msk.f32.mxu1 %vm215_vm1, %v206_v62 }
  0x45   :  { %1319 = vmatmul.mubr.msk.f32.gmra.mxu0 %vm215_vm1, %v175_v63  ;;  %1367 = vmatmul.mubr.msk.f32.gmra.mxu1 %vm215_vm1, %v207_v0 }
  0x46   :  { %1321 = vmatprep.mubr.msk.f32.mxu0 %vm215_vm1, %v176_v1  ;;  %1369 = vmatprep.mubr.msk.f32.mxu1 %vm215_vm1, %v208_v2 }
  0x49   :  { %1322 = vmatmul.mubr.msk.f32.gmra.mxu0 %vm215_vm1, %v177_v3  ;;  %1370 = vmatmul.mubr.msk.f32.gmra.mxu1 %vm215_vm1, %v209_v4 }
  0xcd   :  { %v1278_v6 = vpop.f32.mrf.mxu0  ;;  %v1326_v7 = vpop.f32.mrf.mxu1 }
  0xce   :  { %v1000_v8 = vadd.f32 %v1278_v6, %v1676_v5  ;;  %v1032_v9 = vadd.f32 %v1326_v7, %v1676_v5 }
  0xcf   :  { %v478_v10 = vpop.f32.mrf.mxu0  ;;  %v638_v11 = vpop.f32.mrf.mxu1 }
  0xd0   :  { %1064 = vst [vmem:[%s1937_s3 + $0x8] sm:$0xff] %v1000_v8  ;;  %1096 = vst [vmem:[%s1937_s3 + $0x108] sm:$0xff] %v1032_v9  ;;  %v999_v12 = vadd.f32 %v1676_v5, %v478_v10  ;;  %v1031_v13 = vadd.f32 %v1676_v5, %v638_v11 }
  0xd1   :  { %v1281_v14 = vpop.f32.mrf.mxu0  ;;  %v1329_v15 = vpop.f32.mrf.mxu1 }
  0xd2   :  { %1063 = vst [vmem:[%s1937_s3] sm:$0xff] %v999_v12  ;;  %1095 = vst [vmem:[%s1937_s3 + $0x100] sm:$0xff] %v1031_v13  ;;  %v1002_v16 = vadd.f32 %v1281_v14, %v1676_v5  ;;  %v1034_v17 = vadd.f32 %v1329_v15, %v1676_v5 }
  0xd3   :  { %v488_v18 = vpop.f32.mrf.mxu0  ;;  %v648_v19 = vpop.f32.mrf.mxu1 }
  0xd4   :  { %1066 = vst [vmem:[%s1937_s3 + $0x18] sm:$0xff] %v1002_v16  ;;  %1098 = vst [vmem:[%s1937_s3 + $0x118] sm:$0xff] %v1034_v17  ;;  %v1001_v20 = vadd.f32 %v1676_v5, %v488_v18  ;;  %v1033_v21 = vadd.f32 %v1676_v5, %v648_v19 }
  0xd5   :  { %v1284_v22 = vpop.f32.mrf.mxu0  ;;  %v1332_v23 = vpop.f32.mrf.mxu1 }
  0xd6   :  { %1065 = vst [vmem:[%s1937_s3 + $0x10] sm:$0xff] %v1001_v20  ;;  %1097 = vst [vmem:[%s1937_s3 + $0x110] sm:$0xff] %v1033_v21  ;;  %v1004_v24 = vadd.f32 %v1284_v22, %v1676_v5  ;;  %v1036_v25 = vadd.f32 %v1332_v23, %v1676_v5 }
  0xd7   :  { %v498_v26 = vpop.f32.mrf.mxu0  ;;  %v658_v27 = vpop.f32.mrf.mxu1 }
  0xd8   :  { %1068 = vst [vmem:[%s1937_s3 + $0x28] sm:$0xff] %v1004_v24  ;;  %1100 = vst [vmem:[%s1937_s3 + $0x128] sm:$0xff] %v1036_v25  ;;  %v1003_v28 = vadd.f32 %v1676_v5, %v498_v26  ;;  %v1035_v29 = vadd.f32 %v1676_v5, %v658_v27 }
  0xd9   :  { %v1287_v30 = vpop.f32.mrf.mxu0  ;;  %v1335_v31 = vpop.f32.mrf.mxu1 }
  0xda   :  { %1067 = vst [vmem:[%s1937_s3 + $0x20] sm:$0xff] %v1003_v28  ;;  %1099 = vst [vmem:[%s1937_s3 + $0x120] sm:$0xff] %v1035_v29  ;;  %v1006_v32 = vadd.f32 %v1287_v30, %v1676_v5  ;;  %v1038_v33 = vadd.f32 %v1335_v31, %v1676_v5 }
  0xdb   :  { %v508_v34 = vpop.f32.mrf.mxu0  ;;  %v668_v35 = vpop.f32.mrf.mxu1 }
  0xdc   :  { %1070 = vst [vmem:[%s1937_s3 + $0x38] sm:$0xff] %v1006_v32  ;;  %1102 = vst [vmem:[%s1937_s3 + $0x138] sm:$0xff] %v1038_v33  ;;  %v1005_v36 = vadd.f32 %v1676_v5, %v508_v34  ;;  %v1037_v37 = vadd.f32 %v1676_v5, %v668_v35 }
  0xdd   :  { %v1290_v38 = vpop.f32.mrf.mxu0  ;;  %v1338_v39 = vpop.f32.mrf.mxu1 }
  0xde   :  { %1069 = vst [vmem:[%s1937_s3 + $0x30] sm:$0xff] %v1005_v36  ;;  %1101 = vst [vmem:[%s1937_s3 + $0x130] sm:$0xff] %v1037_v37  ;;  %v1008_v40 = vadd.f32 %v1290_v38, %v1676_v5  ;;  %v1040_v41 = vadd.f32 %v1338_v39, %v1676_v5 }
  0xdf   :  { %v518_v42 = vpop.f32.mrf.mxu0  ;;  %v678_v43 = vpop.f32.mrf.mxu1 }
  0xe0   :  { %1072 = vst [vmem:[%s1937_s3 + $0x48] sm:$0xff] %v1008_v40  ;;  %1104 = vst [vmem:[%s1937_s3 + $0x148] sm:$0xff] %v1040_v41  ;;  %v1007_v44 = vadd.f32 %v1676_v5, %v518_v42  ;;  %v1039_v45 = vadd.f32 %v1676_v5, %v678_v43 }
  0xe1   :  { %v1293_v46 = vpop.f32.mrf.mxu0  ;;  %v1341_v47 = vpop.f32.mrf.mxu1 }
  0xe2   :  { %1071 = vst [vmem:[%s1937_s3 + $0x40] sm:$0xff] %v1007_v44  ;;  %1103 = vst [vmem:[%s1937_s3 + $0x140] sm:$0xff] %v1039_v45  ;;  %v1010_v48 = vadd.f32 %v1293_v46, %v1676_v5  ;;  %v1042_v49 = vadd.f32 %v1341_v47, %v1676_v5 }
  0xe3   :  { %v528_v50 = vpop.f32.mrf.mxu0  ;;  %v688_v51 = vpop.f32.mrf.mxu1 }
  0xe4   :  { %1074 = vst [vmem:[%s1937_s3 + $0x58] sm:$0xff] %v1010_v48  ;;  %1106 = vst [vmem:[%s1937_s3 + $0x158] sm:$0xff] %v1042_v49  ;;  %v1009_v52 = vadd.f32 %v1676_v5, %v528_v50  ;;  %v1041_v53 = vadd.f32 %v1676_v5, %v688_v51 }
  0xe5   :  { %v1296_v54 = vpop.f32.mrf.mxu0  ;;  %v1344_v55 = vpop.f32.mrf.mxu1 }
  0xe6   :  { %1073 = vst [vmem:[%s1937_s3 + $0x50] sm:$0xff] %v1009_v52  ;;  %1105 = vst [vmem:[%s1937_s3 + $0x150] sm:$0xff] %v1041_v53  ;;  %v1012_v56 = vadd.f32 %v1296_v54, %v1676_v5  ;;  %v1044_v57 = vadd.f32 %v1344_v55, %v1676_v5 }
  0xe7   :  { %v538_v58 = vpop.f32.mrf.mxu0  ;;  %v698_v59 = vpop.f32.mrf.mxu1 }
  0xe8   :  { %1076 = vst [vmem:[%s1937_s3 + $0x68] sm:$0xff] %v1012_v56  ;;  %1108 = vst [vmem:[%s1937_s3 + $0x168] sm:$0xff] %v1044_v57  ;;  %v1011_v60 = vadd.f32 %v1676_v5, %v538_v58  ;;  %v1043_v61 = vadd.f32 %v1676_v5, %v698_v59 }
  0xe9   :  { %v1299_v62 = vpop.f32.mrf.mxu0  ;;  %v1347_v63 = vpop.f32.mrf.mxu1 }
  0xea   :  { %1075 = vst [vmem:[%s1937_s3 + $0x60] sm:$0xff] %v1011_v60  ;;  %1107 = vst [vmem:[%s1937_s3 + $0x160] sm:$0xff] %v1043_v61  ;;  %v1014_v0 = vadd.f32 %v1299_v62, %v1676_v5  ;;  %v1046_v1 = vadd.f32 %v1347_v63, %v1676_v5 }
  0xeb   :  { %v548_v2 = vpop.f32.mrf.mxu0  ;;  %v708_v3 = vpop.f32.mrf.mxu1 }
  0xec   :  { %1078 = vst [vmem:[%s1937_s3 + $0x78] sm:$0xff] %v1014_v0  ;;  %1110 = vst [vmem:[%s1937_s3 + $0x178] sm:$0xff] %v1046_v1  ;;  %v1013_v4 = vadd.f32 %v1676_v5, %v548_v2  ;;  %v1045_v6 = vadd.f32 %v1676_v5, %v708_v3 }
  0xed   :  { %v1302_v7 = vpop.f32.mrf.mxu0  ;;  %v1350_v8 = vpop.f32.mrf.mxu1 }
  0xee   :  { %1077 = vst [vmem:[%s1937_s3 + $0x70] sm:$0xff] %v1013_v4  ;;  %1109 = vst [vmem:[%s1937_s3 + $0x170] sm:$0xff] %v1045_v6  ;;  %v1016_v9 = vadd.f32 %v1302_v7, %v1676_v5  ;;  %v1048_v10 = vadd.f32 %v1350_v8, %v1676_v5 }
  0xef   :  { %v558_v11 = vpop.f32.mrf.mxu0  ;;  %v718_v12 = vpop.f32.mrf.mxu1 }
  0xf0   :  { %1080 = vst [vmem:[%s1937_s3 + $0x88] sm:$0xff] %v1016_v9  ;;  %1112 = vst [vmem:[%s1937_s3 + $0x188] sm:$0xff] %v1048_v10  ;;  %v1015_v13 = vadd.f32 %v1676_v5, %v558_v11  ;;  %v1047_v14 = vadd.f32 %v1676_v5, %v718_v12 }
  0xf1   :  { %v1305_v15 = vpop.f32.mrf.mxu0  ;;  %v1353_v16 = vpop.f32.mrf.mxu1 }
  0xf2   :  { %1079 = vst [vmem:[%s1937_s3 + $0x80] sm:$0xff] %v1015_v13  ;;  %1111 = vst [vmem:[%s1937_s3 + $0x180] sm:$0xff] %v1047_v14  ;;  %v1018_v17 = vadd.f32 %v1305_v15, %v1676_v5  ;;  %v1050_v18 = vadd.f32 %v1353_v16, %v1676_v5 }
  0xf3   :  { %v568_v19 = vpop.f32.mrf.mxu0  ;;  %v728_v20 = vpop.f32.mrf.mxu1 }
  0xf4   :  { %1082 = vst [vmem:[%s1937_s3 + $0x98] sm:$0xff] %v1018_v17  ;;  %1114 = vst [vmem:[%s1937_s3 + $0x198] sm:$0xff] %v1050_v18  ;;  %v1017_v21 = vadd.f32 %v1676_v5, %v568_v19  ;;  %v1049_v22 = vadd.f32 %v1676_v5, %v728_v20 }
  0xf5   :  { %v1308_v23 = vpop.f32.mrf.mxu0  ;;  %v1356_v24 = vpop.f32.mrf.mxu1 }
  0xf6   :  { %1081 = vst [vmem:[%s1937_s3 + $0x90] sm:$0xff] %v1017_v21  ;;  %1113 = vst [vmem:[%s1937_s3 + $0x190] sm:$0xff] %v1049_v22  ;;  %v1020_v25 = vadd.f32 %v1308_v23, %v1676_v5  ;;  %v1052_v26 = vadd.f32 %v1356_v24, %v1676_v5 }
  0xf7   :  { %v578_v27 = vpop.f32.mrf.mxu0  ;;  %v738_v28 = vpop.f32.mrf.mxu1 }
  0xf8   :  { %1084 = vst [vmem:[%s1937_s3 + $0xa8] sm:$0xff] %v1020_v25  ;;  %1116 = vst [vmem:[%s1937_s3 + $0x1a8] sm:$0xff] %v1052_v26  ;;  %v1019_v29 = vadd.f32 %v1676_v5, %v578_v27  ;;  %v1051_v30 = vadd.f32 %v1676_v5, %v738_v28 }
  0xf9   :  { %v1311_v31 = vpop.f32.mrf.mxu0  ;;  %v1359_v32 = vpop.f32.mrf.mxu1 }
  0xfa   :  { %1083 = vst [vmem:[%s1937_s3 + $0xa0] sm:$0xff] %v1019_v29  ;;  %1115 = vst [vmem:[%s1937_s3 + $0x1a0] sm:$0xff] %v1051_v30  ;;  %v1022_v33 = vadd.f32 %v1311_v31, %v1676_v5  ;;  %v1054_v34 = vadd.f32 %v1359_v32, %v1676_v5 }
  0xfb   :  { %v588_v35 = vpop.f32.mrf.mxu0  ;;  %v748_v36 = vpop.f32.mrf.mxu1 }
  0xfc   :  { %1086 = vst [vmem:[%s1937_s3 + $0xb8] sm:$0xff] %v1022_v33  ;;  %1118 = vst [vmem:[%s1937_s3 + $0x1b8] sm:$0xff] %v1054_v34  ;;  %v1021_v37 = vadd.f32 %v1676_v5, %v588_v35  ;;  %v1053_v38 = vadd.f32 %v1676_v5, %v748_v36 }
  0xfd   :  { %v1314_v39 = vpop.f32.mrf.mxu0  ;;  %v1362_v40 = vpop.f32.mrf.mxu1 }
  0xfe   :  { %1085 = vst [vmem:[%s1937_s3 + $0xb0] sm:$0xff] %v1021_v37  ;;  %1117 = vst [vmem:[%s1937_s3 + $0x1b0] sm:$0xff] %v1053_v38  ;;  %v1024_v41 = vadd.f32 %v1314_v39, %v1676_v5  ;;  %v1056_v42 = vadd.f32 %v1362_v40, %v1676_v5 }
  0xff   :  { %v598_v43 = vpop.f32.mrf.mxu0  ;;  %v758_v44 = vpop.f32.mrf.mxu1 }
 0x100   :  { %1088 = vst [vmem:[%s1937_s3 + $0xc8] sm:$0xff] %v1024_v41  ;;  %1120 = vst [vmem:[%s1937_s3 + $0x1c8] sm:$0xff] %v1056_v42  ;;  %v1023_v45 = vadd.f32 %v1676_v5, %v598_v43  ;;  %v1055_v46 = vadd.f32 %v1676_v5, %v758_v44 }
 0x101   :  { %v1317_v47 = vpop.f32.mrf.mxu0  ;;  %v1365_v48 = vpop.f32.mrf.mxu1 }
 0x102   :  { %1087 = vst [vmem:[%s1937_s3 + $0xc0] sm:$0xff] %v1023_v45  ;;  %1119 = vst [vmem:[%s1937_s3 + $0x1c0] sm:$0xff] %v1055_v46  ;;  %v1026_v49 = vadd.f32 %v1317_v47, %v1676_v5  ;;  %v1058_v50 = vadd.f32 %v1365_v48, %v1676_v5 }
 0x103   :  { %v608_v51 = vpop.f32.mrf.mxu0  ;;  %v768_v52 = vpop.f32.mrf.mxu1 }
 0x104   :  { %1090 = vst [vmem:[%s1937_s3 + $0xd8] sm:$0xff] %v1026_v49  ;;  %1122 = vst [vmem:[%s1937_s3 + $0x1d8] sm:$0xff] %v1058_v50  ;;  %v1025_v53 = vadd.f32 %v1676_v5, %v608_v51  ;;  %v1057_v54 = vadd.f32 %v1676_v5, %v768_v52 }
 0x105   :  { %v1320_v55 = vpop.f32.mrf.mxu0  ;;  %v1368_v56 = vpop.f32.mrf.mxu1 }
 0x106   :  { %1089 = vst [vmem:[%s1937_s3 + $0xd0] sm:$0xff] %v1025_v53  ;;  %1121 = vst [vmem:[%s1937_s3 + $0x1d0] sm:$0xff] %v1057_v54  ;;  %v1028_v57 = vadd.f32 %v1320_v55, %v1676_v5  ;;  %v1060_v58 = vadd.f32 %v1368_v56, %v1676_v5 }
 0x107   :  { %v618_v59 = vpop.f32.mrf.mxu0  ;;  %v778_v60 = vpop.f32.mrf.mxu1 }
 0x108   :  { %1092 = vst [vmem:[%s1937_s3 + $0xe8] sm:$0xff] %v1028_v57  ;;  %1124 = vst [vmem:[%s1937_s3 + $0x1e8] sm:$0xff] %v1060_v58  ;;  %v1027_v61 = vadd.f32 %v1676_v5, %v618_v59  ;;  %v1059_v62 = vadd.f32 %v1676_v5, %v778_v60 }
 0x109   :  { %v1323_v63 = vpop.f32.mrf.mxu0  ;;  %v1371_v0 = vpop.f32.mrf.mxu1 }
 0x10a   :  { %1091 = vst [vmem:[%s1937_s3 + $0xe0] sm:$0xff] %v1027_v61  ;;  %1123 = vst [vmem:[%s1937_s3 + $0x1e0] sm:$0xff] %v1059_v62  ;;  %v1030_v1 = vadd.f32 %v1323_v63, %v1676_v5  ;;  %v1062_v2 = vadd.f32 %v1371_v0, %v1676_v5 }
 0x10b   :  { %v628_v3 = vpop.f32.mrf.mxu0  ;;  %v788_v4 = vpop.f32.mrf.mxu1 }
 0x10c   :  { %1094 = vst [vmem:[%s1937_s3 + $0xf8] sm:$0xff] %v1030_v1  ;;  %1126 = vst [vmem:[%s1937_s3 + $0x1f8] sm:$0xff] %v1062_v2  ;;  %v1029_v6 = vadd.f32 %v1676_v5, %v628_v3  ;;  %v1061_v7 = vadd.f32 %v1676_v5, %v788_v4 }
 0x10e   :  { %1093 = vst [vmem:[%s1937_s3 + $0xf0] sm:$0xff] %v1029_v6  ;;  %1125 = vst [vmem:[%s1937_s3 + $0x1f0] sm:$0xff] %v1061_v7 }

</bundles_post_ra>
